<compile_context>
chip_gen: v7x
topology: tpu7x:2x2x1
jax: 0.10.0
libtpu: 0.0.40
codegen_flags: <defaults>
</compile_context>

<pallas_src>
import numpy as np
import jax
import jax.numpy as jnp
from jax.experimental import pallas as pl
from jax.experimental.pallas import tpu as pltpu


# ----------------------------------------------------------------------------
# Kernel 1: the MLP  (batch.o = mlp(batch.x).squeeze()), nodes-on-lanes, VPU.
# p=4, H=32 is far too small for a useful MXU pass, so layer 1 is an unrolled
# broadcast-fma chain and layer 2 a sublane reduction.  Large tiles because
# this kernel is per-grid-step-overhead bound, not compute bound.
# ----------------------------------------------------------------------------
def mlp_kernel(x_ref, w1_ref, b1_ref, w2_ref, b2_ref, o_ref):
    x = x_ref[...]                                   # (p, TB)
    p_in, tb = x.shape
    hdim = b1_ref.shape[0]
    acc = jnp.zeros((hdim, tb), jnp.float32)
    for k in range(p_in):                            # p tiny: unrolled VPU fma
        wk = w1_ref[k * hdim:(k + 1) * hdim, :]      # (H, 1)
        acc = acc + wk * x[k:k + 1, :]               # (H,1)*(1,TB) -> (H,TB)
    h = jnp.maximum(acc + b1_ref[...], 0.0)          # (H, TB)
    # second layer (H -> 1): keepdims sublane reduce instead of a 1-wide matmul
    o = jnp.sum(h * w2_ref[...], axis=0, keepdims=True)   # (1, TB)
    o_ref[...] = o + b2_ref[...]


def mlp_forward(x_t, w1_flat, b1_col, w2_col, b2_mat, *, tile_n=2048):
    p, npad = x_t.shape
    hdim = b1_col.shape[0]
    flops = npad * (2 * p * hdim + 4 * hdim)
    bytes_accessed = 4 * (npad * (p + 1) + p * hdim + 2 * hdim + 1)
    return pl.pallas_call(
        mlp_kernel,
        out_shape=jax.ShapeDtypeStruct((1, npad), jnp.float32),
        grid=(npad // tile_n,),
        in_specs=[
            pl.BlockSpec((p, tile_n), lambda i: (0, i)),
            pl.BlockSpec((p * hdim, 1), lambda i: (0, 0)),
            pl.BlockSpec((hdim, 1), lambda i: (0, 0)),
            pl.BlockSpec((hdim, 1), lambda i: (0, 0)),
            pl.BlockSpec((1, 1), lambda i: (0, 0)),
        ],
        out_specs=pl.BlockSpec((1, tile_n), lambda i: (0, i)),
        compiler_params=pltpu.CompilerParams(dimension_semantics=("parallel",)),
        cost_estimate=pl.CostEstimate(flops=flops, transcendentals=0,
                                      bytes_accessed=bytes_accessed),
    )(x_t, w1_flat, b1_col, w2_col, b2_mat)


# ----------------------------------------------------------------------------
# Kernel 2: NNGP decorrelation hot path (nodes-on-lanes, per-lane 8x8 solve)
# ----------------------------------------------------------------------------
def decor_kernel(theta_ref, nbr_ref, cvec_ref, yo_ref, yonbr_ref, out_ref):
    sigma = theta_ref[0]     # theta[0]
    phi = theta_ref[1]       # theta[1]
    tau = theta_ref[2]       # theta[2]

    nbr = nbr_ref[...]       # (d*m, TB) zero-fixed neighbor coords, coord-major
    cvec = cvec_ref[...]     # (m, TB)   Cov_i_Ni (from raw coords, wrapper-built)
    dm, tb = nbr.shape
    m = cvec.shape[0]
    d = dm // m
    coords = [nbr[k * m:(k + 1) * m, :] for k in range(d)]          # (m, TB)

    # --- InverseCovMatrixFromPositions covariance rows, using symmetry and the
    #     constant diagonal sigma*(1+tau).  Only the m(m-1)/2 off-diagonal
    #     distances hit sqrt/exp, packed into one slab (full-vreg EUP issues).
    pairs = [(i, j) for i in range(m) for j in range(i + 1, m)]
    sq_list = []
    for (i, j) in pairs:
        sq = jnp.zeros((1, tb), jnp.float32)
        for k in range(d):
            dk = coords[k][i:i + 1, :] - coords[k][j:j + 1, :]
            sq = sq + dk * dk
        sq_list.append(sq)
    sq_all = jnp.concatenate(sq_list, axis=0)                       # (npairs, TB)
    cov_all = sigma * jnp.exp(-phi * jnp.sqrt(sq_all))              # (npairs, TB)
    ent = {pr: cov_all[idx:idx + 1, :] for idx, pr in enumerate(pairs)}
    diag_row = jnp.zeros((1, tb), jnp.float32) + sigma * (1.0 + tau)

    rows = []
    for i in range(m):
        pieces = [diag_row if j == i else ent[(min(i, j), max(i, j))]
                  for j in range(m)]
        rows.append(jnp.concatenate(pieces, axis=0))                # (m, TB)

    # --- B_i = inv(Cov_Ni_Ni) @ Cov_i_Ni, solved per lane with a normalized
    #     Gauss-Jordan (SPD + nugget, no pivoting needed).  Exactly m
    #     reciprocals total; RHS is packed as one (m, TB) array and updated
    #     with a single fma + select per elimination step.
    rhs = cvec                                                      # (m, TB)
    row_ids = jax.lax.broadcasted_iota(jnp.int32, (m, 1), 0)
    for k in range(m):
        inv_p = 1.0 / rows[k][k:k + 1, :]                           # (1, TB)
        prow = rows[k] * inv_p                                      # pivot row = 1
        rows[k] = prow
        prhs = rhs[k:k + 1, :] * inv_p                              # (1, TB)
        fcol = []
        for i in range(m):
            if i == k:
                fcol.append(jnp.zeros((1, tb), jnp.float32))
            else:
                f = rows[i][k:k + 1, :]                             # factor
                fcol.append(f)
                rows[i] = rows[i] - f * prow                        # (m,TB) fma
        fmat = jnp.concatenate(fcol, axis=0)                        # (m, TB)
        rhs = jnp.where(row_ids == k, prhs, rhs - fmat * prhs)      # packed update

    b_mat = rhs                                                     # B_i, (m, TB)

    # --- F_i and the two decorrelated outputs
    yonbr = yonbr_ref[...]                                          # (2m, TB)
    yo = yo_ref[...]                                                # (2, TB)
    f_acc = jnp.sum(b_mat * cvec, axis=0, keepdims=True)            # (1, TB)
    ydots = jnp.sum(b_mat * yonbr[0:m, :], axis=0, keepdims=True)
    odots = jnp.sum(b_mat * yonbr[m:2 * m, :], axis=0, keepdims=True)

    # F_i = theta[0] + theta[2] - B_i . c_i  (as in the torch module)
    f_i = jnp.maximum(sigma + tau - f_acc, 1e-12)                   # clamp round-off
    rsf = jax.lax.rsqrt(f_i)                                        # (1, TB)

    out_ref[0:1, :] = (yo[0:1, :] - ydots) * rsf                    # lane-dense
    out_ref[1:2, :] = (yo[1:2, :] - odots) * rsf


def decorrelate(theta, nbr_fix, cvec, yo, yo_nbr, *, tile_n=128):
    dm, npad = nbr_fix.shape
    m = cvec.shape[0]
    d = dm // m
    npairs = m * (m - 1) // 2
    flops = npad * (2 * m ** 3 + (3 * d + 4) * npairs + 10 * m + 12)
    transcend = npad * (2 * npairs + m + 1)
    bytes_accessed = 4 * npad * (dm + 3 * m + 6)
    return pl.pallas_call(
        decor_kernel,
        out_shape=jax.ShapeDtypeStruct((2, npad), jnp.float32),
        grid=(npad // tile_n,),
        in_specs=[
            pl.BlockSpec(memory_space=pltpu.MemorySpace.SMEM),       # theta (3,)
            pl.BlockSpec((dm, tile_n), lambda i: (0, i)),            # fixed coords
            pl.BlockSpec((m, tile_n), lambda i: (0, i)),             # cvec (m, N)
            pl.BlockSpec((2, tile_n), lambda i: (0, i)),             # packed y/o
            pl.BlockSpec((2 * m, tile_n), lambda i: (0, i)),         # packed nbr y/o
        ],
        out_specs=pl.BlockSpec((2, tile_n), lambda i: (0, i)),       # packed out
        compiler_params=pltpu.CompilerParams(dimension_semantics=("parallel",)),
        cost_estimate=pl.CostEstimate(flops=flops, transcendentals=transcend,
                                      bytes_accessed=bytes_accessed),
    )(theta, nbr_fix, cvec, yo, yo_nbr)


# ----------------------------------------------------------------------------
# nngls.forward
# ----------------------------------------------------------------------------
def nngls_forward(theta, pos, x, y, edge_index, edge_attr, mlp_params,
                  neighbor_size, key_fix, *, tile_decor=128, tile_mlp=2048):
    n, p = x.shape                     # batch.batch_size = batch.x.shape[0]
    m = neighbor_size
    d = pos.shape[1]
    w1, b1, w2, b2 = mlp_params
    hdim = w1.shape[1]

    # MessagePassing(aggr='sum') with one-hot-per-slot messages == gather table.
    nbr_idx = (jnp.zeros((n, m), jnp.int32)
               .at[edge_index[1], edge_attr].set(edge_index[0]))
    idx_flat = nbr_idx.T.reshape(-1)                 # slot-major flat (m*n,)

    # GatherNeighborPositionsConv, emitted coordinate-major directly (the
    # transpose is folded into the gather index), plus the exact-zero fixup.
    pos_t = pos.T                                                    # (d, n)
    raw = jnp.take(pos_t, idx_flat, axis=1).reshape(d, m, n)         # (d, m, n)
    scale = 10000.0 * (raw.max() - raw.min())
    rnd = jax.random.uniform(key_fix, raw.shape, jnp.float32) * scale
    nbr_fix = jnp.where(raw == 0.0, rnd, raw).reshape(d * m, n)      # (d*m, n)

    # CovarianceVectorConv uses the *raw* gathered positions (fuses with gather).
    sq = jnp.sum((raw - pos_t[:, None, :]) ** 2, axis=0)             # (m, n)
    cvec = theta[0] * jnp.exp(-theta[1] * jnp.sqrt(sq))              # (m, n)

    # batch.o = mlp(batch.x).squeeze() -- Pallas VPU kernel with its own tile.
    npad_mlp = pl.cdiv(n, tile_mlp) * tile_mlp
    x_t = jnp.pad(x.T, ((0, 0), (0, npad_mlp - n)))                  # (p, npad_mlp)
    o_pad = mlp_forward(x_t, w1.reshape(p * hdim, 1), b1.reshape(hdim, 1),
                        w2.reshape(hdim, 1), b2.reshape(1, 1), tile_n=tile_mlp)
    o = o_pad[0, :n]                                                 # (n,)

    # GatherNeighborInfoConv (targets + outputs), slot-major, packed streams.
    y_nbr = jnp.take(y[:n], idx_flat, axis=0).reshape(m, n)          # (m, n)
    o_nbr = jnp.take(o, idx_flat, axis=0).reshape(m, n)              # (m, n)

    npad = pl.cdiv(n, tile_decor) * tile_decor
    padw = ((0, 0), (0, npad - n))
    yo = jnp.pad(jnp.stack([y[:n], o], axis=0), padw)                # (2, npad)
    yo_nbr = jnp.pad(jnp.concatenate([y_nbr, o_nbr], axis=0), padw)  # (2m, npad)
    nbr_fix_p = jnp.pad(nbr_fix, padw)                               # (d*m, npad)
    cvec_p = jnp.pad(cvec, padw)                                     # (m, npad)

    dec = decorrelate(theta, nbr_fix_p, cvec_p, yo, yo_nbr,
                      tile_n=tile_decor)                             # (2, npad)
    y_decor = dec[0, :n]
    o_decor = dec[1, :n]
    preds = o
    return y_decor, o_decor, preds


# ----------------------------------------------------------------------------
# Pure-JAX reference (mirrors the torch module op-for-op) for verification.
# The zero-fix uses the same key and the same (d, m, n) random-draw layout as
# the kernel wrapper, so kernel and reference agree even if zeros exist.
# ----------------------------------------------------------------------------
def nngls_reference(theta, pos, x, y, edge_index, edge_attr, mlp_params,
                    neighbor_size, key_fix):
    sigma, phi, tau = theta[0], theta[1], theta[2]
    n = x.shape[0]
    m = neighbor_size
    d = pos.shape[1]
    w1, b1, w2, b2 = mlp_params
    hi = jax.lax.Precision.HIGHEST
    nbr_idx = (jnp.zeros((n, m), jnp.int32)
               .at[edge_index[1], edge_attr].set(edge_index[0]))
    nbr_pos = pos[nbr_idx]                                           # (n, m, d)
    cvec = sigma * jnp.exp(-phi * jnp.linalg.norm(nbr_pos - pos[:, None, :], axis=-1))
    rnd = jnp.transpose(jax.random.uniform(key_fix, (d, m, n), jnp.float32), (2, 1, 0))
    rnd = rnd * 10000.0 * (nbr_pos.max() - nbr_pos.min())
    npos = jnp.where(nbr_pos == 0.0, rnd, nbr_pos)
    dists = jnp.linalg.norm(npos[:, :, None, :] - npos[:, None, :, :], axis=-1)
    cov = sigma * jnp.exp(-phi * dists) + (sigma * tau) * jnp.eye(m, dtype=jnp.float32)
    inv_cov = jnp.linalg.inv(cov)
    b_i = jnp.einsum('nij,nj->ni', inv_cov, cvec, precision=hi)
    f_i = sigma + tau - jnp.sum(b_i * cvec, axis=-1)
    h = jnp.maximum(jnp.dot(x, w1, precision=hi) + b1, 0.0)
    o = (jnp.dot(h, w2, precision=hi) + b2)[:, 0]
    y_decor = (y[:n] - jnp.sum(y[nbr_idx] * b_i, axis=-1)) / jnp.sqrt(f_i)
    o_decor = (o[:n] - jnp.sum(o[nbr_idx] * b_i, axis=-1)) / jnp.sqrt(f_i)
    return y_decor, o_decor, o


if __name__ == "__main__":
    # nodes, p, neighbor_size, coord_dims, hidden; N deliberately not a tile
    # multiple (exercises padding) and > 2 decor tiles (exercises the grid and
    # both v7x TensorCores).
    N, P, M, D, H = 300, 4, 8, 2, 32
    key = jax.random.PRNGKey(0)
    kpos, kx, ky, kw1, kw2, kfix = jax.random.split(key, 6)

    pos = jax.random.uniform(kpos, (N, D), jnp.float32, 0.0, 10.0)
    x = jax.random.normal(kx, (N, P), jnp.float32)
    y = jax.random.normal(ky, (N,), jnp.float32)
    theta = jnp.array([1.5, 0.5, 0.1], jnp.float32)   # (sigma^2, phi, tau)

    # mlp = Linear(P->H) + ReLU + Linear(H->1), deterministic init
    w1 = jax.random.normal(kw1, (P, H), jnp.float32) / jnp.sqrt(P)
    b1 = jnp.zeros((1, H), jnp.float32)
    w2 = jax.random.normal(kw2, (H, 1), jnp.float32) / jnp.sqrt(H)
    b2 = jnp.zeros((1, 1), jnp.float32)
    mlp_params = (w1, b1, w2, b2)

    # Synthetic NN graph: slot-s neighbor of node i is node (i + s + 1) mod N.
    dst = jnp.repeat(jnp.arange(N, dtype=jnp.int32), M)
    slots = jnp.tile(jnp.arange(M, dtype=jnp.int32), N)
    src = (dst + slots + 1) % N
    edge_index = jnp.stack([src, dst])        # (2, N*M)
    edge_attr = slots                         # (N*M,) neighbor-slot per edge

    y_decor, o_decor, preds = nngls_forward(
        theta, pos, x, y, edge_index, edge_attr, mlp_params, M, kfix,
        tile_decor=128, tile_mlp=2048)
    jax.block_until_ready((y_decor, o_decor, preds))

    y_ref, o_ref, p_ref = nngls_reference(
        theta, pos, x, y, edge_index, edge_attr, mlp_params, M, kfix)
    np.testing.assert_allclose(np.asarray(y_decor), np.asarray(y_ref), rtol=1e-3, atol=1e-3)
    np.testing.assert_allclose(np.asarray(o_decor), np.asarray(o_ref), rtol=1e-3, atol=1e-3)
    np.testing.assert_allclose(np.asarray(preds), np.asarray(p_ref), rtol=1e-3, atol=1e-3)

    print("KERNEL_OK")
</pallas_src>

<mosaic_0001>
module attributes {stable_mosaic.version = 11 : i64} {
  func.func @mlp_kernel(%arg0: i32, %arg1: memref<4x2048xf32, #tpu.memory_space<vmem>>, %arg2: memref<128x1xf32, #tpu.memory_space<vmem>>, %arg3: memref<32x1xf32, #tpu.memory_space<vmem>>, %arg4: memref<32x1xf32, #tpu.memory_space<vmem>>, %arg5: memref<1x1xf32, #tpu.memory_space<vmem>>, %arg6: memref<1x2048xf32, #tpu.memory_space<vmem>>) attributes {dimension_semantics = [#tpu.dimension_semantics<parallel>], iteration_bounds = array<i64: 1>, scalar_prefetch = 0 : i64, scratch_operands = 0 : i64, tpu.core_type = #tpu.core_type<tc>, window_params = [{transform_indices = @transform_0, window_bounds = array<i64: 4, 2048>}, {pipeline_mode = #tpu.pipeline_mode<synchronous>, transform_indices = @transform_1, window_bounds = array<i64: 128, 1>}, {pipeline_mode = #tpu.pipeline_mode<synchronous>, transform_indices = @transform_2, window_bounds = array<i64: 32, 1>}, {pipeline_mode = #tpu.pipeline_mode<synchronous>, transform_indices = @transform_3, window_bounds = array<i64: 32, 1>}, {pipeline_mode = #tpu.pipeline_mode<synchronous>, transform_indices = @transform_4, window_bounds = array<i64: 1, 1>}, {transform_indices = @transform_5, window_bounds = array<i64: 1, 2048>}]} {
    %c0 = arith.constant 0 : index
    %c0_0 = arith.constant 0 : index
    %0 = vector.load %arg1[%c0, %c0_0] : memref<4x2048xf32, #tpu.memory_space<vmem>>, vector<4x2048xf32>
    %cst = arith.constant 0.000000e+00 : f32
    %1 = vector.broadcast %cst : f32 to vector<32x2048xf32>
    %c0_1 = arith.constant 0 : index
    %c0_2 = arith.constant 0 : index
    %2 = vector.load %arg2[%c0_1, %c0_2] : memref<128x1xf32, #tpu.memory_space<vmem>>, vector<32x1xf32>
    %3 = vector.extract_strided_slice %0 {offsets = [0, 0], sizes = [1, 2048], strides = [1, 1]} : vector<4x2048xf32> to vector<1x2048xf32>
    %4 = vector.broadcast %2 : vector<32x1xf32> to vector<32x2048xf32>
    %5 = vector.broadcast %3 : vector<1x2048xf32> to vector<32x2048xf32>
    %6 = arith.mulf %4, %5 : vector<32x2048xf32>
    %7 = arith.addf %1, %6 : vector<32x2048xf32>
    %c32 = arith.constant 32 : index
    %c0_3 = arith.constant 0 : index
    %8 = vector.load %arg2[%c32, %c0_3] : memref<128x1xf32, #tpu.memory_space<vmem>>, vector<32x1xf32>
    %9 = vector.extract_strided_slice %0 {offsets = [1, 0], sizes = [1, 2048], strides = [1, 1]} : vector<4x2048xf32> to vector<1x2048xf32>
    %10 = vector.broadcast %8 : vector<32x1xf32> to vector<32x2048xf32>
    %11 = vector.broadcast %9 : vector<1x2048xf32> to vector<32x2048xf32>
    %12 = arith.mulf %10, %11 : vector<32x2048xf32>
    %13 = arith.addf %7, %12 : vector<32x2048xf32>
    %c64 = arith.constant 64 : index
    %c0_4 = arith.constant 0 : index
    %14 = vector.load %arg2[%c64, %c0_4] : memref<128x1xf32, #tpu.memory_space<vmem>>, vector<32x1xf32>
    %15 = vector.extract_strided_slice %0 {offsets = [2, 0], sizes = [1, 2048], strides = [1, 1]} : vector<4x2048xf32> to vector<1x2048xf32>
    %16 = vector.broadcast %14 : vector<32x1xf32> to vector<32x2048xf32>
    %17 = vector.broadcast %15 : vector<1x2048xf32> to vector<32x2048xf32>
    %18 = arith.mulf %16, %17 : vector<32x2048xf32>
    %19 = arith.addf %13, %18 : vector<32x2048xf32>
    %c96 = arith.constant 96 : index
    %c0_5 = arith.constant 0 : index
    %20 = vector.load %arg2[%c96, %c0_5] : memref<128x1xf32, #tpu.memory_space<vmem>>, vector<32x1xf32>
    %21 = vector.extract_strided_slice %0 {offsets = [3, 0], sizes = [1, 2048], strides = [1, 1]} : vector<4x2048xf32> to vector<1x2048xf32>
    %22 = vector.broadcast %20 : vector<32x1xf32> to vector<32x2048xf32>
    %23 = vector.broadcast %21 : vector<1x2048xf32> to vector<32x2048xf32>
    %24 = arith.mulf %22, %23 : vector<32x2048xf32>
    %25 = arith.addf %19, %24 : vector<32x2048xf32>
    %c0_6 = arith.constant 0 : index
    %c0_7 = arith.constant 0 : index
    %26 = vector.load %arg3[%c0_6, %c0_7] : memref<32x1xf32, #tpu.memory_space<vmem>>, vector<32x1xf32>
    %27 = vector.broadcast %26 : vector<32x1xf32> to vector<32x2048xf32>
    %28 = arith.addf %25, %27 : vector<32x2048xf32>
    %cst_8 = arith.constant 0.000000e+00 : f32
    %29 = vector.broadcast %cst_8 : f32 to vector<32x2048xf32>
    %30 = arith.maximumf %28, %29 : vector<32x2048xf32>
    %c0_9 = arith.constant 0 : index
    %c0_10 = arith.constant 0 : index
    %31 = vector.load %arg4[%c0_9, %c0_10] : memref<32x1xf32, #tpu.memory_space<vmem>>, vector<32x1xf32>
    %32 = vector.broadcast %31 : vector<32x1xf32> to vector<32x2048xf32>
    %33 = arith.mulf %30, %32 : vector<32x2048xf32>
    %cst_11 = arith.constant dense<0.000000e+00> : vector<2048xf32>
    %34 = vector.multi_reduction <add>, %33, %cst_11 [0] : vector<32x2048xf32> to vector<2048xf32>
    %35 = vector.shape_cast %34 : vector<2048xf32> to vector<1x2048xf32>
    %c0_12 = arith.constant 0 : index
    %c0_13 = arith.constant 0 : index
    %36 = vector.load %arg5[%c0_12, %c0_13] : memref<1x1xf32, #tpu.memory_space<vmem>>, vector<1x1xf32>
    %37 = vector.broadcast %36 : vector<1x1xf32> to vector<1x2048xf32>
    %38 = arith.addf %35, %37 : vector<1x2048xf32>
    %c0_14 = arith.constant 0 : index
    %c0_15 = arith.constant 0 : index
    %39 = vector.load %arg6[%c0_14, %c0_15] : memref<1x2048xf32, #tpu.memory_space<vmem>>, vector<1x2048xf32>
    tpu.vector_store %arg6[%c0_14, %c0_15], %38 {strides = array<i32>} : memref<1x2048xf32, #tpu.memory_space<vmem>>, vector<1x2048xf32>,
    return
  }
  func.func @transform_0(%arg0: i32) -> (i32, i32) {
    %c0_i32 = arith.constant 0 : i32
    %c0_i32_0 = arith.constant 0 : i32
    return %c0_i32, %arg0 : i32, i32
  }
  func.func @transform_1(%arg0: i32) -> (i32, i32) {
    %c0_i32 = arith.constant 0 : i32
    %c0_i32_0 = arith.constant 0 : i32
    %c0_i32_1 = arith.constant 0 : i32
    return %c0_i32, %c0_i32_0 : i32, i32
  }
  func.func @transform_2(%arg0: i32) -> (i32, i32) {
    %c0_i32 = arith.constant 0 : i32
    %c0_i32_0 = arith.constant 0 : i32
    %c0_i32_1 = arith.constant 0 : i32
    return %c0_i32, %c0_i32_0 : i32, i32
  }
  func.func @transform_3(%arg0: i32) -> (i32, i32) {
    %c0_i32 = arith.constant 0 : i32
    %c0_i32_0 = arith.constant 0 : i32
    %c0_i32_1 = arith.constant 0 : i32
    return %c0_i32, %c0_i32_0 : i32, i32
  }
  func.func @transform_4(%arg0: i32) -> (i32, i32) {
    %c0_i32 = arith.constant 0 : i32
    %c0_i32_0 = arith.constant 0 : i32
    %c0_i32_1 = arith.constant 0 : i32
    return %c0_i32, %c0_i32_0 : i32, i32
  }
  func.func @transform_5(%arg0: i32) -> (i32, i32) {
    %c0_i32 = arith.constant 0 : i32
    %c0_i32_0 = arith.constant 0 : i32
    return %c0_i32, %arg0 : i32, i32
  }
}

</mosaic_0001>

<bundles_post_ra>
// kernel: tpu_custom_call.1
= control target key start
LH: loop header
LB: loop body
LE: loop exit
PB: predicated region body
PF: predicated region fallthrough
CT: control target
= control target key end

     0   :  { %s4530_s0 = inlined_call_operand.vmem [shape: f32[4,2048], index: 0, kind: input, shape index: {}]   ;;  %s4531_s1 = inlined_call_operand.vmem [shape: f32[128,1], index: 1, kind: input, shape index: {}]   ;;  %s4532_s2 = inlined_call_operand.vmem [shape: f32[32,1], index: 2, kind: input, shape index: {}]   ;;  %s4533_s3 = inlined_call_operand.vmem [shape: f32[32,1], index: 3, kind: input, shape index: {}]   ;;  %s4534_s4 = inlined_call_operand.<no memory space> [shape: f32[1,1], index: 4, kind: input, shape index: {}]   ;;  %s4535_s5 = inlined_call_operand.hbm [shape: f32[1,2048], index: 5, kind: output, shape index: {}]  }
   0x1   :  { %v10_v0 = vstv %s4534_s4 }
   0x2   :  { %11 = vst [vmem:[#allocation2] sm:$0x1] %v10_v0 }
   0x3   :  { %v335_v1 = vld [vmem:[%s4531_s1 + $0x20] sm:$0xff]  ;;  %v1794_v3 = vmov 0   ;;  %v336_v4 = vld [vmem:[%s4531_s1 + $0x28] sm:$0xff]  ;;  %v337_v6 = vld [vmem:[%s4531_s1 + $0x30] sm:$0xff] }
   0x4   :  { %v31_v2 = vld [vmem:[%s4531_s1] sm:$0xff]  ;;  %1769 = vset.pattern.permute.xlu1 %v1794_v3  ;;  %1768 = vset.pattern.permute.xlu0 %v1794_v3  ;;  %v32_v5 = vld [vmem:[%s4531_s1 + $0x8] sm:$0xff]  ;;  %v33_v7 = vld [vmem:[%s4531_s1 + $0x10] sm:$0xff] }
   0x5   :  { %341 = vperm.xlu1 %1769, %v335_v1   ;;  %37 = vperm.xlu0 %1768, %v31_v2  }
   0x9   :  { %346 = vperm.xlu1 %1769, %v336_v4   ;;  %42 = vperm.xlu0 %1768, %v32_v5  }
   0xa   :  { %12 = vsyncpa [#allocation4], 0  ;;  %v632_v8 = vld [vmem:[%s4531_s1 + $0x48] sm:$0xff]  ;;  %v631_v9 = vld [vmem:[%s4531_s1 + $0x40] sm:$0xff]  ;;  %v63_v27 = vlaneseq }
   0xb   :  { %v338_v10 = vld [vmem:[%s4531_s1 + $0x38] sm:$0xff]  ;;  %v927_v12 = vld [vmem:[%s4531_s1 + $0x60] sm:$0xff]  ;;  %v633_v13 = vld [vmem:[%s4531_s1 + $0x50] sm:$0xff] }
   0xc   :  { %v34_v11 = vld [vmem:[%s4531_s1 + $0x18] sm:$0xff]  ;;  %v928_v15 = vld [vmem:[%s4531_s1 + $0x68] sm:$0xff]  ;;  %v929_v17 = vld [vmem:[%s4531_s1 + $0x70] sm:$0xff]  ;;  %v1902_v28 = vshrl.u32 %v63_v27, 7 }
   0xd   :  { %351 = vperm.xlu1 %1769, %v337_v6   ;;  %47 = vperm.xlu0 %1768, %v33_v7   ;;  %v634_v14 = vld [vmem:[%s4531_s1 + $0x58] sm:$0xff]  ;;  %v1224_v18 = vld [vmem:[%s4532_s2 + $0x8] sm:$0xff]  ;;  %v1223_v19 = vld [vmem:[%s4532_s2] sm:$0xff] }
   0xe   :  { %v930_v16 = vld [vmem:[%s4531_s1 + $0x78] sm:$0xff]  ;;  %v1225_v21 = vld [vmem:[%s4532_s2 + $0x10] sm:$0xff]  ;;  %v1376_v22 = vld [vmem:[%s4533_s3 + $0x8] sm:$0xff]  ;;  %4609 = vst [vmem:[#allocation6_spill] sm:$0xff] %v1902_v28  ;;  %v1905_v29 = vsub.s32 0, %v1902_v28  ;;  %v69_v30 = vsub.s32 4, %v1902_v28 }
   0xf   :  { %v1226_v20 = vld [vmem:[%s4532_s2 + $0x18] sm:$0xff]  ;;  %v1375_v23 = vld [vmem:[%s4533_s3] sm:$0xff]  ;;  %v1377_v25 = vld [vmem:[%s4533_s3 + $0x10] sm:$0xff]  ;;  %v1914_v32 = vsub.s32 1, %v1902_v28  ;;  %v1917_v33 = vsub.s32 5, %v1902_v28 }
  0x10   :  { %v1378_v24 = vld [vmem:[%s4533_s3 + $0x18] sm:$0xff]  ;;  %v1607_v26 = vld [vmem:[#allocation2] sm:$0x1]  ;;  %4610 = vst [vmem:[#allocation7_spill] sm:$0xff] %v1905_v29  ;;  %v1922_v34 = vld [vmem:[%s4530_s0 + $0x8] sm:$0xff] }
  0x11   :  { %642 = vperm.xlu1 %1769, %v632_v8   ;;  %637 = vperm.xlu0 %1768, %v631_v9   ;;  %v1911_v31 = vld [vmem:[%s4530_s0] sm:$0xff]  ;;  %v1927_v35 = vld [vmem:[%s4530_s0 + $0x10] sm:$0xff]  ;;  %v1932_v36 = vld [vmem:[%s4530_s0 + $0x18] sm:$0xff]  ;;  %v74_v43 = vrot.slane %v1922_v34, %v1905_v29  ;;  %v78_v44 = vrot.slane %v1922_v34, %v69_v30 }
  0x12   :  { %v1937_v37 = vld [vmem:[%s4530_s0 + $0x20] sm:$0xff]  ;;  %v1942_v38 = vld [vmem:[%s4530_s0 + $0x28] sm:$0xff]  ;;  %v66_v39 = vrot.slane %v1911_v31, %v1905_v29  ;;  %v70_v40 = vrot.slane %v1911_v31, %v69_v30  ;;  %v1950_v41 = vld [vmem:[%s4530_s0 + $0x30] sm:$0xff]  ;;  %v362_v45 = vrot.slane %v1911_v31, %v1914_v32  ;;  %v366_v46 = vrot.slane %v1911_v31, %v1917_v33 }
  0x13   :  { %v1955_v42 = vld [vmem:[%s4530_s0 + $0x38] sm:$0xff]  ;;  %v82_v47 = vrot.slane %v1927_v35, %v1905_v29  ;;  %v86_v48 = vrot.slane %v1927_v35, %v69_v30  ;;  %v90_v49 = vrot.slane %v1932_v36, %v1905_v29  ;;  %v94_v50 = vrot.slane %v1932_v36, %v69_v30  ;;  %s1796_s0 = smov [#allocation3]  }
  0x14   :  { %v98_v51 = vrot.slane %v1937_v37, %v1905_v29  ;;  %v102_v52 = vrot.slane %v1937_v37, %v69_v30  ;;  %v106_v53 = vrot.slane %v1942_v38, %v1905_v29  ;;  %v110_v54 = vrot.slane %v1942_v38, %v69_v30  ;;  %s1757_s28 = sshll.u32 %s1796_s0, 4  ;;  %s1758_s28 = int_to_ptr.vmem [resolvable:$true] %s1757_s28 }
  0x15   :  { %356 = vperm.xlu1 %1769, %v338_v10   ;;  %52 = vperm.xlu0 %1768, %v34_v11   ;;  %v114_v55 = vrot.slane %v1950_v41, %v1905_v29  ;;  %v118_v56 = vrot.slane %v1950_v41, %v69_v30  ;;  %v122_v57 = vrot.slane %v1955_v42, %v1905_v29  ;;  %s1770_s29 = scalar_lea.vmem %s1758_s28, 256  ;;  %p1775_p1 = scmp.lt.s32.totalorder %s1758_s28, %s1758_s28 }
  0x16   :  { %v126_v58 = vrot.slane %v1955_v42, %v69_v30  ;;  %v1983_v59 = vrot.slane %v66_v39, %v1905_v29  ;;  %v1986_v60 = vrot.slane %v70_v40, %v1905_v29  ;;  %v1989_v61 = vrot.slane %v74_v43, %v1905_v29  ;;  %p1771_p0 = scmp.ne.s32.totalorder %s1758_s28, %s1770_s29  ;;  %p1776_p2 = scmp.lt.s32.totalorder %s1770_s29, %s1770_s29 }
  0x17   :  { %v1992_v62 = vrot.slane %v78_v44, %v1905_v29  ;;  %v1995_v63 = vrot.slane %v82_v47, %v1905_v29  ;;  %v1998_v0 = vrot.slane %v86_v48, %v1905_v29  ;;  %v2001_v1 = vrot.slane %v90_v49, %v1905_v29 }
  0x18   :  { %v2004_v2 = vrot.slane %v94_v50, %v1905_v29  ;;  %v2007_v3 = vrot.slane %v98_v51, %v1905_v29  ;;  %v2010_v4 = vrot.slane %v102_v52, %v1905_v29  ;;  %v2013_v5 = vrot.slane %v106_v53, %v1905_v29  ;;  %p1777_p3 = por %p1776_p2, %p1775_p1 }
  0x19   :  { %933 = vperm.xlu1 %1769, %v927_v12   ;;  %647 = vperm.xlu0 %1768, %v633_v13   ;;  %v2016_v6 = vrot.slane %v110_v54, %v1905_v29  ;;  %v2019_v7 = vrot.slane %v114_v55, %v1905_v29  ;;  %v2022_v8 = vrot.slane %v118_v56, %v1905_v29  ;;  %v657_v39 = vsub.s32 2, %v1902_v28 }
  0x1a   :  { %v2025_v9 = vrot.slane %v122_v57, %v1905_v29  ;;  %v2028_v10 = vrot.slane %v126_v58, %v1905_v29  ;;  %v370_v11 = vrot.slane %v1922_v34, %v1914_v32  ;;  %v374_v12 = vrot.slane %v1922_v34, %v1917_v33  ;;  %p1778_p4 = pnand %p1777_p3, %p1771_p0 }
  0x1b   :  { %v378_v13 = vrot.slane %v1927_v35, %v1914_v32  ;;  %v661_v40 = vsub.s32 6, %v1902_v28  ;;  %v658_v54 = vrot.slane %v1911_v31, %v657_v39  ;;  %v666_v56 = vrot.slane %v1922_v34, %v657_v39 }
  0x1c   :  { %v2065_v27 = vrot.slane %v370_v11, %v1914_v32  ;;  %v2068_v30 = vrot.slane %v374_v12, %v1914_v32  ;;  %v674_v58 = vrot.slane %v1927_v35, %v657_v39  ;;  %v682_v12 = vrot.slane %v1932_v36, %v657_v39 }
  0x1d   :  { %652 = vperm.xlu1 %1769, %v634_v14   ;;  %938 = vperm.xlu0 %1768, %v928_v15   ;;  %v382_v14 = vrot.slane %v1927_v35, %v1917_v33  ;;  %v386_v15 = vrot.slane %v1932_v36, %v1914_v32  ;;  %v2073_v43 = vrot.slane %v378_v13, %v1914_v32 }
  0x1e   :  { %v662_v55 = vrot.slane %v1911_v31, %v661_v40  ;;  %v670_v57 = vrot.slane %v1922_v34, %v661_v40  ;;  %v678_v11 = vrot.slane %v1927_v35, %v661_v40  ;;  %v686_v13 = vrot.slane %v1932_v36, %v661_v40 }
  0x1f   :  { %v2079_v44 = vrot.slane %v386_v15, %v1914_v32  ;;  %v698_v15 = vrot.slane %v1942_v38, %v657_v39  ;;  %v2130_v29 = vrot.slane %v666_v56, %v657_v39 }
  0x21   :  { %948 = vperm.xlu1 %1769, %v930_v16   ;;  %943 = vperm.xlu0 %1768, %v929_v17   ;;  %v390_v16 = vrot.slane %v1932_v36, %v1917_v33  ;;  %v394_v17 = vrot.slane %v1937_v37, %v1914_v32  ;;  %4618 = vst [vmem:[#allocation15_spill] sm:$0xff] %v2130_v29 }
  0x25   :  { %1234 = vperm.xlu1 %1769, %v1224_v18   ;;  %1229 = vperm.xlu0 %1768, %v1223_v19   ;;  %v398_v18 = vrot.slane %v1937_v37, %v1917_v33  ;;  %v402_v19 = vrot.slane %v1942_v38, %v1914_v32 }
  0x27   :  { %v2088_v47 = vrot.slane %v398_v18, %v1914_v32  ;;  %v2091_v48 = vrot.slane %v402_v19, %v1914_v32  ;;  %v710_v18 = vrot.slane %v1950_v41, %v661_v40  ;;  %v714_v19 = vrot.slane %v1955_v42, %v657_v39 }
  0x29   :  { %1244 = vperm.xlu1 %1769, %v1226_v20   ;;  %1239 = vperm.xlu0 %1768, %v1225_v21   ;;  %v406_v20 = vrot.slane %v1942_v38, %v1917_v33  ;;  %v410_v21 = vrot.slane %v1950_v41, %v1914_v32 }
  0x2b   :  { %v2094_v49 = vrot.slane %v406_v20, %v1914_v32  ;;  %v2097_v50 = vrot.slane %v410_v21, %v1914_v32  ;;  %v718_v20 = vrot.slane %v1955_v42, %v661_v40  ;;  %v2124_v21 = vrot.slane %v658_v54, %v657_v39 }
  0x2d   :  { %1386 = vperm.xlu1 %1769, %v1376_v22   ;;  %1381 = vperm.xlu0 %1768, %v1375_v23   ;;  %v414_v22 = vrot.slane %v1950_v41, %v1917_v33  ;;  %v418_v23 = vrot.slane %v1955_v42, %v1914_v32  ;;  %4611 = vst [vmem:[#allocation8_spill] sm:$0xff] %v2094_v49  ;;  %4612 = vst [vmem:[#allocation9_spill] sm:$0xff] %v2097_v50 }
  0x2e   :  { %4616 = vst [vmem:[#allocation13_spill] sm:$0xff] %v2124_v21  ;;  %v2138_v50 = vrot.slane %v682_v12, %v657_v39  ;;  %v2140_v49 = vrot.slane %v686_v13, %v657_v39 }
  0x2f   :  { %v2100_v51 = vrot.slane %v414_v22, %v1914_v32  ;;  %v2103_v52 = vrot.slane %v418_v23, %v1914_v32  ;;  %v2126_v22 = vrot.slane %v662_v55, %v657_v39  ;;  %v953_v23 = vsub.s32 3, %v1902_v28 }
  0x30   :  { %4622 = vst [vmem:[#allocation19_spill] sm:$0xff] %v2138_v50  ;;  %4623 = vst [vmem:[#allocation20_spill] sm:$0xff] %v2140_v49  ;;  %v2146_v55 = vrot.slane %v698_v15, %v657_v39 }
  0x31   :  { %1396 = vperm.xlu1 %1769, %v1378_v24   ;;  %1391 = vperm.xlu0 %1768, %v1377_v25   ;;  %v422_v24 = vrot.slane %v1955_v42, %v1917_v33  ;;  %v2059_v25 = vrot.slane %v362_v45, %v1914_v32  ;;  %v2076_v33 = vrot.slane %v382_v14, %v1914_v32 }
  0x32   :  { %v2082_v45 = vrot.slane %v390_v16, %v1914_v32  ;;  %4613 = vst [vmem:[#allocation10_spill] sm:$0xff] %v2100_v51  ;;  %4614 = vst [vmem:[#allocation11_spill] sm:$0xff] %v2103_v52  ;;  %v690_v14 = vrot.slane %v1937_v37, %v657_v39  ;;  %v702_v16 = vrot.slane %v1942_v38, %v661_v40 }
  0x33   :  { %v2106_v53 = vrot.slane %v422_v24, %v1914_v32  ;;  %4617 = vst [vmem:[#allocation14_spill] sm:$0xff] %v2126_v22  ;;  %v957_v24 = vsub.s32 7, %v1902_v28  ;;  %v2134_v52 = vrot.slane %v674_v58, %v657_v39  ;;  %v2136_v51 = vrot.slane %v678_v11, %v657_v39  ;;  %4626 = vst [vmem:[#allocation23_spill] sm:$0xff] %v2146_v55 }
  0x34   :  { %v2148_v22 = vrot.slane %v702_v16, %v657_v39  ;;  %v2154_v58 = vrot.slane %v714_v19, %v657_v39  ;;  %v2156_v11 = vrot.slane %v718_v20, %v657_v39  ;;  %v954_v12 = vrot.slane %v1911_v31, %v953_v23 }
  0x35   :  { %1610 = vperm.xlu0 %1768, %v1607_v26   ;;  %v2062_v26 = vrot.slane %v366_v46, %v1914_v32  ;;  %v2085_v46 = vrot.slane %v394_v17, %v1914_v32  ;;  %4615 = vst [vmem:[#allocation12_spill] sm:$0xff] %v2106_v53  ;;  %v694_v32 = vrot.slane %v1937_v37, %v661_v40  ;;  %4620 = vst [vmem:[#allocation17_spill] sm:$0xff] %v2134_v52 }
  0x36   :  { %v706_v17 = vrot.slane %v1950_v41, %v657_v39  ;;  %v2132_v53 = vrot.slane %v670_v57, %v657_v39  ;;  %4621 = vst [vmem:[#allocation18_spill] sm:$0xff] %v2136_v51  ;;  %v2142_v40 = vrot.slane %v690_v14, %v657_v39  ;;  %4627 = vst [vmem:[#allocation24_spill] sm:$0xff] %v2148_v22 }
  0x37   :  { %v2144_v54 = vrot.slane %v694_v32, %v657_v39  ;;  %v2152_v57 = vrot.slane %v710_v18, %v657_v39  ;;  %4630 = vst [vmem:[#allocation27_spill] sm:$0xff] %v2154_v58  ;;  %4631 = vst [vmem:[#allocation28_spill] sm:$0xff] %v2156_v11  ;;  %v958_v13 = vrot.slane %v1911_v31, %v957_v24 }
  0x38   :  { %4619 = vst [vmem:[#allocation16_spill] sm:$0xff] %v2132_v53  ;;  %4624 = vst [vmem:[#allocation21_spill] sm:$0xff] %v2142_v40  ;;  %v2150_v56 = vrot.slane %v706_v17, %v657_v39  ;;  %v962_v14 = vrot.slane %v1922_v34, %v953_v23  ;;  %v966_v32 = vrot.slane %v1922_v34, %v957_v24 }
  0x39   :  { %4625 = vst [vmem:[#allocation22_spill] sm:$0xff] %v2144_v54  ;;  %4629 = vst [vmem:[#allocation26_spill] sm:$0xff] %v2152_v57  ;;  %v970_v15 = vrot.slane %v1927_v35, %v953_v23  ;;  %v974_v16 = vrot.slane %v1927_v35, %v957_v24  ;;  %v978_v17 = vrot.slane %v1932_v36, %v953_v23 }
  0x3a   :  { %4628 = vst [vmem:[#allocation25_spill] sm:$0xff] %v2150_v56  ;;  %v982_v18 = vrot.slane %v1932_v36, %v957_v24  ;;  %v986_v19 = vrot.slane %v1937_v37, %v953_v23  ;;  %v990_v39 = vrot.slane %v1937_v37, %v957_v24  ;;  %v994_v20 = vrot.slane %v1942_v38, %v953_v23 }
  0x3b   :  { %v998_v31 = vrot.slane %v1942_v38, %v957_v24  ;;  %v1002_v28 = vrot.slane %v1950_v41, %v953_v23  ;;  %v1006_v34 = vrot.slane %v1950_v41, %v957_v24  ;;  %v1010_v11 = vrot.slane %v1955_v42, %v953_v23 }
  0x3c   :  { %v1014_v35 = vrot.slane %v1955_v42, %v957_v24  ;;  %v2174_v58 = vrot.slane %v954_v12, %v953_v23  ;;  %v2176_v57 = vrot.slane %v958_v13, %v953_v23  ;;  %v2178_v36 = vrot.slane %v962_v14, %v953_v23 }
  0x3d   :  { %v2180_v56 = vrot.slane %v966_v32, %v953_v23  ;;  %v2182_v37 = vrot.slane %v970_v15, %v953_v23  ;;  %v2184_v22 = vrot.slane %v974_v16, %v953_v23  ;;  %v2186_v55 = vrot.slane %v978_v17, %v953_v23 }
  0x3e   :  { %4632 = vst [vmem:[#allocation29_spill] sm:$0xff] %v2174_v58  ;;  %4633 = vst [vmem:[#allocation30_spill] sm:$0xff] %v2176_v57  ;;  %v2188_v41 = vrot.slane %v982_v18, %v953_v23  ;;  %v2190_v54 = vrot.slane %v986_v19, %v953_v23  ;;  %v2192_v42 = vrot.slane %v990_v39, %v953_v23 }
  0x3f   :  { %4634 = vst [vmem:[#allocation31_spill] sm:$0xff] %v2178_v36  ;;  %4635 = vst [vmem:[#allocation32_spill] sm:$0xff] %v2180_v56  ;;  %v2194_v24 = vrot.slane %v994_v20, %v953_v23  ;;  %v2196_v12 = vrot.slane %v998_v31, %v953_v23  ;;  %v2198_v13 = vrot.slane %v1002_v28, %v953_v23 }
  0x40   :  { %4636 = vst [vmem:[#allocation33_spill] sm:$0xff] %v2182_v37  ;;  %4637 = vst [vmem:[#allocation34_spill] sm:$0xff] %v2184_v22  ;;  %v2200_v14 = vrot.slane %v1006_v34, %v953_v23  ;;  %v2208_v16 = vrot.slane %v1010_v11, %v953_v23  ;;  %v2210_v17 = vrot.slane %v1014_v35, %v953_v23 }
  0x41   :  { %4638 = vst [vmem:[#allocation35_spill] sm:$0xff] %v2186_v55  ;;  %4639 = vst [vmem:[#allocation36_spill] sm:$0xff] %v2188_v41 }
  0x42   :  { %4640 = vst [vmem:[#allocation37_spill] sm:$0xff] %v2190_v54  ;;  %4641 = vst [vmem:[#allocation38_spill] sm:$0xff] %v2192_v42 }
  0x43   :  { %4642 = vst [vmem:[#allocation39_spill] sm:$0xff] %v2194_v24  ;;  %4643 = vst [vmem:[#allocation40_spill] sm:$0xff] %v2196_v12 }
  0x44   :  { %4644 = vst [vmem:[#allocation41_spill] sm:$0xff] %v2198_v13  ;;  %4645 = vst [vmem:[#allocation42_spill] sm:$0xff] %v2200_v14 }
  0x45   :  { %4646 = vst [vmem:[#allocation43_spill] sm:$0xff] %v2208_v16  ;;  %4647 = vst [vmem:[#allocation44_spill] sm:$0xff] %v2210_v17 }
  0x84   :  { %v38_v38 = vpop.permute.xlu0 %37  ;;  %v2212_v18 = vpop.permute.xlu1 %341 }
  0x85   :  { %v2203_v32 = vmul.f32 %v1983_v59, %v38_v38  ;;  %v2206_v15 = vmul.f32 %v1986_v60, %v38_v38  ;;  %v2215_v19 = vmul.f32 %v1989_v61, %v38_v38  ;;  %v2218_v28 = vmul.f32 %v1992_v62, %v38_v38 }
  0x86   :  { %v2221_v39 = vmul.f32 %v1995_v63, %v38_v38  ;;  %v2224_v20 = vmul.f32 %v1998_v0, %v38_v38  ;;  %v2227_v11 = vmul.f32 %v2001_v1, %v38_v38  ;;  %v2230_v23 = vmul.f32 %v2004_v2, %v38_v38 }
  0x87   :  { %v2233_v34 = vmul.f32 %v2007_v3, %v38_v38  ;;  %v2236_v35 = vmul.f32 %v2010_v4, %v38_v38  ;;  %v2239_v17 = vmul.f32 %v2013_v5, %v38_v38  ;;  %v2242_v16 = vmul.f32 %v2016_v6, %v38_v38 }
  0x88   :  { %v43_v31 = vpop.permute.xlu0 %42  ;;  %v2245_v14 = vmul.f32 %v2019_v7, %v38_v38  ;;  %v2248_v13 = vmul.f32 %v2022_v8, %v38_v38  ;;  %v2251_v12 = vmul.f32 %v2025_v9, %v38_v38  ;;  %v2254_v24 = vmul.f32 %v2028_v10, %v38_v38  ;;  %v2286_v40 = vpop.permute.xlu1 %346 }
  0x89   :  { %4648 = vst [vmem:[#allocation45_spill] sm:$0xff] %v2242_v16  ;;  %v2257_v42 = vmul.f32 %v1983_v59, %v43_v31  ;;  %v2260_v54 = vmul.f32 %v1986_v60, %v43_v31  ;;  %v2263_v41 = vmul.f32 %v1989_v61, %v43_v31  ;;  %v2266_v55 = vmul.f32 %v1992_v62, %v43_v31 }
  0x8a   :  { %4649 = vst [vmem:[#allocation46_spill] sm:$0xff] %v2245_v14  ;;  %4650 = vst [vmem:[#allocation47_spill] sm:$0xff] %v2248_v13  ;;  %v2269_v22 = vmul.f32 %v1995_v63, %v43_v31  ;;  %v2272_v37 = vmul.f32 %v1998_v0, %v43_v31  ;;  %v2275_v56 = vmul.f32 %v2001_v1, %v43_v31  ;;  %v4694_v13 = vld [vmem:[#allocation11_spill] sm:$0xff] }
  0x8b   :  { %4651 = vst [vmem:[#allocation48_spill] sm:$0xff] %v2251_v12  ;;  %4652 = vst [vmem:[#allocation49_spill] sm:$0xff] %v2254_v24  ;;  %v2278_v36 = vmul.f32 %v2004_v2, %v43_v31  ;;  %v2281_v57 = vmul.f32 %v2007_v3, %v43_v31  ;;  %v2284_v58 = vmul.f32 %v2010_v4, %v43_v31 }
  0x8c   :  { %4653 = vst [vmem:[#allocation50_spill] sm:$0xff] %v2257_v42  ;;  %4654 = vst [vmem:[#allocation51_spill] sm:$0xff] %v2260_v54  ;;  %v48_v38 = vpop.permute.xlu0 %47  ;;  %v2289_v49 = vmul.f32 %v2013_v5, %v43_v31  ;;  %v2292_v50 = vmul.f32 %v2016_v6, %v43_v31  ;;  %v2295_v51 = vmul.f32 %v2019_v7, %v43_v31  ;;  %v4691_v54 = vld [vmem:[#allocation10_spill] sm:$0xff] }
  0x8d   :  { %4655 = vst [vmem:[#allocation52_spill] sm:$0xff] %v2263_v41  ;;  %4656 = vst [vmem:[#allocation53_spill] sm:$0xff] %v2266_v55  ;;  %v2298_v52 = vmul.f32 %v2022_v8, %v43_v31  ;;  %v2301_v53 = vmul.f32 %v2025_v9, %v43_v31  ;;  %v2304_v29 = vmul.f32 %v2028_v10, %v43_v31  ;;  %v4689_v55 = vld [vmem:[#allocation9_spill] sm:$0xff] }
  0x8e   :  { %4657 = vst [vmem:[#allocation54_spill] sm:$0xff] %v2269_v22  ;;  %4658 = vst [vmem:[#allocation55_spill] sm:$0xff] %v2272_v37  ;;  %v2307_v21 = vmul.f32 %v1983_v59, %v48_v38  ;;  %v4687_v37 = vld [vmem:[#allocation8_spill] sm:$0xff]  ;;  %v2408_v41 = vmul.f32 %v4689_v55, %v2212_v18  ;;  %v2412_v42 = vmul.f32 %v4691_v54, %v2212_v18 }
  0x8f   :  { %4659 = vst [vmem:[#allocation56_spill] sm:$0xff] %v2275_v56  ;;  %4660 = vst [vmem:[#allocation57_spill] sm:$0xff] %v2278_v36  ;;  %v2396_v36 = vmul.f32 %v2088_v47, %v2212_v18  ;;  %v2400_v56 = vmul.f32 %v2091_v48, %v2212_v18  ;;  %v2404_v22 = vmul.f32 %v4687_v37, %v2212_v18 }
  0x90   :  { %4661 = vst [vmem:[#allocation58_spill] sm:$0xff] %v2281_v57  ;;  %4662 = vst [vmem:[#allocation59_spill] sm:$0xff] %v2284_v58  ;;  %v2324_v31 = vpop.permute.xlu0 %637  ;;  %v2388_v58 = vmul.f32 %v2082_v45, %v2212_v18  ;;  %v2392_v57 = vmul.f32 %v2085_v46, %v2212_v18  ;;  %v2422_v14 = vmul.f32 %v4694_v13, %v2212_v18 }
  0x91   :  { %4663 = vst [vmem:[#allocation60_spill] sm:$0xff] %v2289_v49  ;;  %4664 = vst [vmem:[#allocation61_spill] sm:$0xff] %v2292_v50  ;;  %v2310_v49 = vmul.f32 %v1986_v60, %v48_v38  ;;  %v2313_v50 = vmul.f32 %v1989_v61, %v48_v38 }
  0x92   :  { %4665 = vst [vmem:[#allocation62_spill] sm:$0xff] %v2295_v51  ;;  %4666 = vst [vmem:[#allocation63_spill] sm:$0xff] %v2298_v52  ;;  %v2316_v51 = vmul.f32 %v1992_v62, %v48_v38  ;;  %v2319_v52 = vmul.f32 %v1995_v63, %v48_v38 }
  0x93   :  { %4667 = vst [vmem:[#allocation64_spill] sm:$0xff] %v2301_v53  ;;  %4668 = vst [vmem:[#allocation65_spill] sm:$0xff] %v2304_v29  ;;  %v2322_v53 = vmul.f32 %v1998_v0, %v48_v38  ;;  %v2327_v29 = vmul.f32 %v2001_v1, %v48_v38 }
  0x94   :  { %4669 = vst [vmem:[#allocation66_spill] sm:$0xff] %v2307_v21  ;;  %4670 = vst [vmem:[#allocation67_spill] sm:$0xff] %v2310_v49  ;;  %v2330_v21 = vmul.f32 %v2004_v2, %v48_v38  ;;  %v2333_v49 = vmul.f32 %v2007_v3, %v48_v38 }
  0x95   :  { %4671 = vst [vmem:[#allocation68_spill] sm:$0xff] %v2313_v50  ;;  %4672 = vst [vmem:[#allocation69_spill] sm:$0xff] %v2316_v51  ;;  %v2336_v50 = vmul.f32 %v2010_v4, %v48_v38  ;;  %v2339_v51 = vmul.f32 %v2013_v5, %v48_v38 }
  0x96   :  { %4673 = vst [vmem:[#allocation70_spill] sm:$0xff] %v2319_v52  ;;  %4674 = vst [vmem:[#allocation71_spill] sm:$0xff] %v2322_v53  ;;  %v2342_v52 = vmul.f32 %v2016_v6, %v48_v38  ;;  %v2384_v53 = vmul.f32 %v2079_v44, %v2212_v18 }
  0x97   :  { %4675 = vst [vmem:[#allocation72_spill] sm:$0xff] %v2324_v31  ;;  %4676 = vst [vmem:[#allocation73_spill] sm:$0xff] %v2327_v29  ;;  %v2345_v31 = vmul.f32 %v2019_v7, %v48_v38  ;;  %v2348_v29 = vmul.f32 %v2022_v8, %v48_v38 }
  0x98   :  { %4677 = vst [vmem:[#allocation74_spill] sm:$0xff] %v2330_v21  ;;  %4678 = vst [vmem:[#allocation75_spill] sm:$0xff] %v2333_v49  ;;  %v2351_v21 = vmul.f32 %v2025_v9, %v48_v38  ;;  %v2354_v49 = vmul.f32 %v2028_v10, %v48_v38  ;;  %v2376_v38 = vmul.f32 %v2073_v43, %v2212_v18 }
  0x99   :  { %4679 = vst [vmem:[#allocation76_spill] sm:$0xff] %v2336_v50  ;;  %4680 = vst [vmem:[#allocation77_spill] sm:$0xff] %v2339_v51  ;;  %v2358_v50 = vmul.f32 %v2059_v25, %v2212_v18  ;;  %v2362_v51 = vmul.f32 %v2062_v26, %v2212_v18 }
  0x9a   :  { %4681 = vst [vmem:[#allocation78_spill] sm:$0xff] %v2342_v52  ;;  %4682 = vst [vmem:[#allocation79_spill] sm:$0xff] %v2345_v31  ;;  %v2364_v52 = vpop.permute.xlu1 %351  ;;  %v2368_v31 = vmul.f32 %v2065_v27, %v2212_v18 }
  0x9b   :  { %4683 = vst [vmem:[#allocation80_spill] sm:$0xff] %v2348_v29  ;;  %4684 = vst [vmem:[#allocation81_spill] sm:$0xff] %v2351_v21  ;;  %v2372_v21 = vmul.f32 %v2068_v30, %v2212_v18  ;;  %v53_v29 = vpop.permute.xlu0 %52 }
  0x9c   :  { %4685 = vst [vmem:[#allocation82_spill] sm:$0xff] %v2354_v49  ;;  %v2380_v49 = vmul.f32 %v2076_v33, %v2212_v18  ;;  %4686 = vst [vmem:[#allocation83_spill] sm:$0xff] %v2400_v56  ;;  %v2415_v24 = vmul.f32 %v1983_v59, %v53_v29  ;;  %v2418_v12 = vmul.f32 %v1986_v60, %v53_v29 }
  0x9d   :  { %4688 = vst [vmem:[#allocation8_spill] sm:$0xff] %v2404_v22  ;;  %4690 = vst [vmem:[#allocation9_spill] sm:$0xff] %v2408_v41  ;;  %v4695_v22 = vld [vmem:[#allocation12_spill] sm:$0xff]  ;;  %v2429_v41 = vmul.f32 %v1989_v61, %v53_v29  ;;  %v2432_v56 = vmul.f32 %v1992_v62, %v53_v29  ;;  %v2435_v59 = vmul.f32 %v1995_v63, %v53_v29 }
  0x9e   :  { %4692 = vst [vmem:[#allocation10_spill] sm:$0xff] %v2415_v24  ;;  %4693 = vst [vmem:[#allocation84_spill] sm:$0xff] %v2418_v12  ;;  %v2426_v16 = vmul.f32 %v4695_v22, %v2212_v18  ;;  %v2438_v60 = vmul.f32 %v1998_v0, %v53_v29  ;;  %v2443_v24 = vmul.f32 %v2001_v1, %v53_v29 }
  0x9f   :  { %4696 = vst [vmem:[#allocation11_spill] sm:$0xff] %v2429_v41  ;;  %4697 = vst [vmem:[#allocation12_spill] sm:$0xff] %v2432_v56  ;;  %v2440_v12 = vpop.permute.xlu0 %647  ;;  %v2446_v18 = vmul.f32 %v2004_v2, %v53_v29  ;;  %v2449_v61 = vmul.f32 %v2007_v3, %v53_v29  ;;  %v2452_v62 = vmul.f32 %v2010_v4, %v53_v29  ;;  %v2454_v56 = vpop.permute.xlu1 %642 }
  0xa0   :  { %4698 = vst [vmem:[#allocation85_spill] sm:$0xff] %v2435_v59  ;;  %4699 = vst [vmem:[#allocation86_spill] sm:$0xff] %v2438_v60  ;;  %v2457_v63 = vmul.f32 %v2013_v5, %v53_v29  ;;  %v2460_v0 = vmul.f32 %v2016_v6, %v53_v29  ;;  %v2463_v1 = vmul.f32 %v2019_v7, %v53_v29 }
  0xa1   :  { %4700 = vst [vmem:[#allocation87_spill] sm:$0xff] %v2440_v12  ;;  %4701 = vst [vmem:[#allocation88_spill] sm:$0xff] %v2443_v24  ;;  %v2466_v2 = vmul.f32 %v2022_v8, %v53_v29  ;;  %v2469_v3 = vmul.f32 %v2025_v9, %v53_v29  ;;  %v2472_v4 = vmul.f32 %v2028_v10, %v53_v29 }
  0xa2   :  { %4702 = vst [vmem:[#allocation89_spill] sm:$0xff] %v2446_v18  ;;  %4703 = vst [vmem:[#allocation90_spill] sm:$0xff] %v2449_v61  ;;  %v2476_v12 = vmul.f32 %v2059_v25, %v2286_v40  ;;  %v2480_v5 = vmul.f32 %v2062_v26, %v2286_v40  ;;  %v2484_v6 = vmul.f32 %v2065_v27, %v2286_v40 }
  0xa3   :  { %4704 = vst [vmem:[#allocation91_spill] sm:$0xff] %v2452_v62  ;;  %4705 = vst [vmem:[#allocation92_spill] sm:$0xff] %v2454_v56  ;;  %v2488_v7 = vmul.f32 %v2068_v30, %v2286_v40  ;;  %v2492_v29 = vmul.f32 %v2073_v43, %v2286_v40  ;;  %v2496_v8 = vmul.f32 %v2076_v33, %v2286_v40  ;;  %v2498_v9 = vpop.permute.xlu0 %938  ;;  %v357_v24 = vpop.permute.xlu1 %356 }
  0xa4   :  { %4706 = vst [vmem:[#allocation93_spill] sm:$0xff] %v2457_v63  ;;  %4707 = vst [vmem:[#allocation94_spill] sm:$0xff] %v2460_v0  ;;  %v2502_v10 = vmul.f32 %v2079_v44, %v2286_v40  ;;  %v2506_v56 = vmul.f32 %v2082_v45, %v2286_v40  ;;  %v2530_v0 = vmul.f32 %v4691_v54, %v2286_v40 }
  0xa5   :  { %4708 = vst [vmem:[#allocation95_spill] sm:$0xff] %v2463_v1  ;;  %4709 = vst [vmem:[#allocation96_spill] sm:$0xff] %v2466_v2  ;;  %v2518_v2 = vmul.f32 %v2091_v48, %v2286_v40  ;;  %v2526_v1 = vmul.f32 %v4689_v55, %v2286_v40  ;;  %v2534_v63 = vmul.f32 %v4694_v13, %v2286_v40 }
  0xa6   :  { %4710 = vst [vmem:[#allocation97_spill] sm:$0xff] %v2469_v3  ;;  %4711 = vst [vmem:[#allocation98_spill] sm:$0xff] %v2472_v4  ;;  %v2510_v4 = vmul.f32 %v2085_v46, %v2286_v40  ;;  %v2514_v3 = vmul.f32 %v2088_v47, %v2286_v40  ;;  %v2538_v62 = vmul.f32 %v4695_v22, %v2286_v40 }
  0xa7   :  { %4712 = vst [vmem:[#allocation99_spill] sm:$0xff] %v2498_v9  ;;  %v2522_v9 = vmul.f32 %v4687_v37, %v2286_v40  ;;  %v2542_v61 = vmul.f32 %v2059_v25, %v2364_v52  ;;  %v2546_v18 = vmul.f32 %v2062_v26, %v2364_v52  ;;  %v2550_v60 = vmul.f32 %v2065_v27, %v2364_v52 }
  0xa8   :  { %4713 = vst [vmem:[#allocation100_spill] sm:$0xff] %v2538_v62  ;;  %v2554_v59 = vmul.f32 %v2068_v30, %v2364_v52  ;;  %v2558_v40 = vmul.f32 %v2073_v43, %v2364_v52  ;;  %v2562_v41 = vmul.f32 %v2076_v33, %v2364_v52  ;;  %v2616_v62 = vmul.f32 %v2068_v30, %v357_v24 }
  0xa9   :  { %4714 = vst [vmem:[#allocation101_spill] sm:$0xff] %v2542_v61  ;;  %4715 = vst [vmem:[#allocation102_spill] sm:$0xff] %v2546_v18  ;;  %v2564_v61 = vpop.permute.xlu0 %943  ;;  %v2568_v18 = vmul.f32 %v2079_v44, %v2364_v52  ;;  %v2636_v30 = vmul.f32 %v2088_v47, %v357_v24 }
  0xaa   :  { %4716 = vst [vmem:[#allocation103_spill] sm:$0xff] %v2550_v60  ;;  %4717 = vst [vmem:[#allocation104_spill] sm:$0xff] %v2554_v59  ;;  %v2572_v60 = vmul.f32 %v2082_v45, %v2364_v52  ;;  %v2576_v59 = vmul.f32 %v2085_v46, %v2364_v52 }
  0xab   :  { %4718 = vst [vmem:[#allocation105_spill] sm:$0xff] %v2558_v40  ;;  %4719 = vst [vmem:[#allocation106_spill] sm:$0xff] %v2562_v41  ;;  %v2580_v40 = vmul.f32 %v2088_v47, %v2364_v52  ;;  %v2584_v41 = vmul.f32 %v2091_v48, %v2364_v52  ;;  %v2658_v47 = vadd.f32 %v2358_v50, %v2203_v32 }
  0xac   :  { %4720 = vst [vmem:[#allocation107_spill] sm:$0xff] %v2564_v61  ;;  %4721 = vst [vmem:[#allocation108_spill] sm:$0xff] %v2568_v18  ;;  %v2588_v61 = vmul.f32 %v4687_v37, %v2364_v52  ;;  %v2592_v18 = vmul.f32 %v4689_v55, %v2364_v52  ;;  %v2678_v50 = vadd.f32 %v2380_v49, %v2224_v20  ;;  %v4732_v49 = vld [vmem:[#allocation83_spill] sm:$0xff] }
  0xad   :  { %4722 = vst [vmem:[#allocation109_spill] sm:$0xff] %v2572_v60  ;;  %4723 = vst [vmem:[#allocation110_spill] sm:$0xff] %v2576_v59  ;;  %v2596_v60 = vmul.f32 %v4691_v54, %v2364_v52  ;;  %v2600_v59 = vmul.f32 %v4694_v13, %v2364_v52  ;;  %v2700_v32 = vadd.f32 %v4732_v49, %v2239_v17  ;;  %v4737_v20 = vld [vmem:[#allocation47_spill] sm:$0xff]  ;;  %v4742_v49 = vld [vmem:[#allocation52_spill] sm:$0xff] }
  0xae   :  { %4724 = vst [vmem:[#allocation111_spill] sm:$0xff] %v2580_v40  ;;  %4725 = vst [vmem:[#allocation112_spill] sm:$0xff] %v2584_v41  ;;  %v2604_v40 = vmul.f32 %v4695_v22, %v2364_v52  ;;  %v2607_v41 = vmul.f32 %v2059_v25, %v357_v24  ;;  %v2624_v52 = vpop.permute.xlu0 %1229  ;;  %v2627_v25 = vmul.f32 %v2079_v44, %v357_v24 }
  0xaf   :  { %4726 = vst [vmem:[#allocation113_spill] sm:$0xff] %v2588_v61  ;;  %4727 = vst [vmem:[#allocation114_spill] sm:$0xff] %v2592_v18  ;;  %v2610_v61 = vmul.f32 %v2062_v26, %v357_v24  ;;  %v2613_v18 = vmul.f32 %v2065_v27, %v357_v24  ;;  %v2630_v26 = vmul.f32 %v2082_v45, %v357_v24 }
  0xb0   :  { %4728 = vst [vmem:[#allocation115_spill] sm:$0xff] %v2596_v60  ;;  %4729 = vst [vmem:[#allocation116_spill] sm:$0xff] %v2600_v59  ;;  %v2619_v60 = vmul.f32 %v2073_v43, %v357_v24  ;;  %v2622_v59 = vmul.f32 %v2076_v33, %v357_v24  ;;  %v2633_v27 = vmul.f32 %v2085_v46, %v357_v24 }
  0xb1   :  { %4730 = vst [vmem:[#allocation117_spill] sm:$0xff] %v2624_v52  ;;  %v2639_v43 = vmul.f32 %v2091_v48, %v357_v24  ;;  %v2642_v33 = vmul.f32 %v4687_v37, %v357_v24  ;;  %v2645_v52 = vmul.f32 %v4689_v55, %v357_v24  ;;  %v2648_v44 = vmul.f32 %v4691_v54, %v357_v24 }
  0xb2   :  { %v2651_v45 = vmul.f32 %v4694_v13, %v357_v24  ;;  %v2654_v46 = vmul.f32 %v4695_v22, %v357_v24  ;;  %v2662_v48 = vadd.f32 %v2362_v51, %v2206_v15  ;;  %v2666_v55 = vadd.f32 %v2368_v31, %v2215_v19  ;;  %v2680_v37 = vpop.permute.xlu0 %1239  ;;  %v4733_v15 = vld [vmem:[#allocation45_spill] sm:$0xff]  ;;  %v4734_v19 = vld [vmem:[#allocation8_spill] sm:$0xff]  ;;  %v4741_v31 = vld [vmem:[#allocation51_spill] sm:$0xff] }
  0xb3   :  { %v2670_v54 = vadd.f32 %v2372_v21, %v2218_v28  ;;  %v2674_v22 = vadd.f32 %v2376_v38, %v2221_v39  ;;  %4731 = vst [vmem:[#allocation118_spill] sm:$0xff] %v2680_v37  ;;  %v2684_v51 = vadd.f32 %v2384_v53, %v2227_v11  ;;  %v2688_v24 = vadd.f32 %v2388_v58, %v2230_v23  ;;  %v4735_v28 = vld [vmem:[#allocation46_spill] sm:$0xff]  ;;  %v4736_v39 = vld [vmem:[#allocation9_spill] sm:$0xff]  ;;  %v4738_v11 = vld [vmem:[#allocation48_spill] sm:$0xff] }
  0xb4   :  { %v2692_v21 = vadd.f32 %v2392_v57, %v2233_v34  ;;  %v2696_v13 = vadd.f32 %v2396_v36, %v2236_v35  ;;  %v2704_v53 = vadd.f32 %v4734_v19, %v4733_v15  ;;  %v2708_v58 = vadd.f32 %v4736_v39, %v4735_v28  ;;  %v4739_v23 = vld [vmem:[#allocation49_spill] sm:$0xff]  ;;  %v4740_v34 = vld [vmem:[#allocation50_spill] sm:$0xff]  ;;  %v4746_v28 = vld [vmem:[#allocation55_spill] sm:$0xff] }
  0xb5   :  { %v2712_v57 = vadd.f32 %v2412_v42, %v4737_v20  ;;  %v2716_v36 = vadd.f32 %v2422_v14, %v4738_v11  ;;  %v2720_v17 = vadd.f32 %v2426_v16, %v4739_v23  ;;  %v2724_v35 = vadd.f32 %v2476_v12, %v4740_v34  ;;  %v4743_v15 = vld [vmem:[#allocation53_spill] sm:$0xff]  ;;  %v4744_v19 = vld [vmem:[#allocation54_spill] sm:$0xff]  ;;  %v4780_v37 = vld [vmem:[#allocation104_spill] sm:$0xff] }
  0xb6   :  { %v2728_v38 = vadd.f32 %v2480_v5, %v4741_v31  ;;  %v2732_v42 = vadd.f32 %v2484_v6, %v4742_v49  ;;  %v2736_v14 = vadd.f32 %v2488_v7, %v4743_v15  ;;  %v2740_v16 = vadd.f32 %v2492_v29, %v4744_v19  ;;  %v2746_v39 = vpop.permute.xlu0 %1381  ;;  %v4749_v5 = vld [vmem:[#allocation56_spill] sm:$0xff]  ;;  %v4751_v6 = vld [vmem:[#allocation57_spill] sm:$0xff]  ;;  %v4753_v7 = vld [vmem:[#allocation58_spill] sm:$0xff] }
  0xb7   :  { %v2744_v12 = vadd.f32 %v2496_v8, %v4746_v28  ;;  %4748 = vst [vmem:[#allocation8_spill] sm:$0xff] %v2746_v39  ;;  %v2750_v20 = vadd.f32 %v2502_v10, %v4749_v5  ;;  %v2754_v11 = vadd.f32 %v2506_v56, %v4751_v6  ;;  %v2758_v23 = vadd.f32 %v2510_v4, %v4753_v7  ;;  %v4755_v29 = vld [vmem:[#allocation59_spill] sm:$0xff]  ;;  %v4757_v8 = vld [vmem:[#allocation60_spill] sm:$0xff]  ;;  %v4759_v49 = vld [vmem:[#allocation61_spill] sm:$0xff] }
  0xb8   :  { %4745 = vst [vmem:[#allocation83_spill] sm:$0xff] %v2740_v16  ;;  %v2762_v34 = vadd.f32 %v2514_v3, %v4755_v29  ;;  %v2766_v31 = vadd.f32 %v2518_v2, %v4757_v8  ;;  %v2770_v10 = vadd.f32 %v2522_v9, %v4759_v49  ;;  %v4761_v15 = vld [vmem:[#allocation62_spill] sm:$0xff]  ;;  %v4763_v19 = vld [vmem:[#allocation63_spill] sm:$0xff]  ;;  %v4765_v28 = vld [vmem:[#allocation64_spill] sm:$0xff] }
  0xb9   :  { %4747 = vst [vmem:[#allocation45_spill] sm:$0xff] %v2744_v12  ;;  %4750 = vst [vmem:[#allocation46_spill] sm:$0xff] %v2750_v20  ;;  %v2774_v56 = vadd.f32 %v2526_v1, %v4761_v15  ;;  %v2778_v4 = vadd.f32 %v2530_v0, %v4763_v19  ;;  %v2782_v3 = vadd.f32 %v2534_v63, %v4765_v28  ;;  %v4767_v5 = vld [vmem:[#allocation65_spill] sm:$0xff]  ;;  %v4768_v6 = vld [vmem:[#allocation100_spill] sm:$0xff] }
  0xba   :  { %4752 = vst [vmem:[#allocation9_spill] sm:$0xff] %v2754_v11  ;;  %4754 = vst [vmem:[#allocation47_spill] sm:$0xff] %v2758_v23  ;;  %v2786_v2 = vadd.f32 %v4768_v6, %v4767_v5  ;;  %v4770_v7 = vld [vmem:[#allocation66_spill] sm:$0xff]  ;;  %v4771_v29 = vld [vmem:[#allocation101_spill] sm:$0xff] }
  0xbb   :  { %4756 = vst [vmem:[#allocation48_spill] sm:$0xff] %v2762_v34  ;;  %4758 = vst [vmem:[#allocation49_spill] sm:$0xff] %v2766_v31  ;;  %v2790_v9 = vadd.f32 %v4771_v29, %v4770_v7  ;;  %v4773_v8 = vld [vmem:[#allocation67_spill] sm:$0xff]  ;;  %v4774_v49 = vld [vmem:[#allocation102_spill] sm:$0xff]  ;;  %v2812_v29 = vpop.permute.xlu0 %1391 }
  0xbc   :  { %4760 = vst [vmem:[#allocation50_spill] sm:$0xff] %v2770_v10  ;;  %4762 = vst [vmem:[#allocation51_spill] sm:$0xff] %v2774_v56  ;;  %v2794_v1 = vadd.f32 %v4774_v49, %v4773_v8  ;;  %v4776_v15 = vld [vmem:[#allocation68_spill] sm:$0xff]  ;;  %v4777_v39 = vld [vmem:[#allocation103_spill] sm:$0xff] }
  0xbd   :  { %4764 = vst [vmem:[#allocation52_spill] sm:$0xff] %v2778_v4  ;;  %4766 = vst [vmem:[#allocation53_spill] sm:$0xff] %v2782_v3  ;;  %v2798_v0 = vadd.f32 %v4777_v39, %v4776_v15  ;;  %v4779_v19 = vld [vmem:[#allocation69_spill] sm:$0xff]  ;;  %v4782_v28 = vld [vmem:[#allocation70_spill] sm:$0xff] }
  0xbe   :  { %4769 = vst [vmem:[#allocation54_spill] sm:$0xff] %v2786_v2  ;;  %4772 = vst [vmem:[#allocation55_spill] sm:$0xff] %v2790_v9  ;;  %v2802_v63 = vadd.f32 %v4780_v37, %v4779_v19  ;;  %v4783_v3 = vld [vmem:[#allocation105_spill] sm:$0xff]  ;;  %v4785_v6 = vld [vmem:[#allocation71_spill] sm:$0xff] }
  0xbf   :  { %4775 = vst [vmem:[#allocation56_spill] sm:$0xff] %v2794_v1  ;;  %4778 = vst [vmem:[#allocation57_spill] sm:$0xff] %v2798_v0  ;;  %v2806_v5 = vadd.f32 %v4783_v3, %v4782_v28  ;;  %v4786_v2 = vld [vmem:[#allocation106_spill] sm:$0xff]  ;;  %v4789_v8 = vld [vmem:[#allocation73_spill] sm:$0xff] }
  0xc0   :  { %4781 = vst [vmem:[#allocation58_spill] sm:$0xff] %v2802_v63  ;;  %v2810_v7 = vadd.f32 %v4786_v2, %v4785_v6  ;;  %4788 = vst [vmem:[#allocation61_spill] sm:$0xff] %v2812_v29  ;;  %v4790_v49 = vld [vmem:[#allocation108_spill] sm:$0xff]  ;;  %v4792_v39 = vld [vmem:[#allocation74_spill] sm:$0xff] }
  0xc1   :  { %4784 = vst [vmem:[#allocation59_spill] sm:$0xff] %v2806_v5  ;;  %v2816_v1 = vadd.f32 %v4790_v49, %v4789_v8  ;;  %v4793_v15 = vld [vmem:[#allocation109_spill] sm:$0xff]  ;;  %v4795_v37 = vld [vmem:[#allocation75_spill] sm:$0xff]  ;;  %v4796_v19 = vld [vmem:[#allocation110_spill] sm:$0xff] }
  0xc2   :  { %4787 = vst [vmem:[#allocation60_spill] sm:$0xff] %v2810_v7  ;;  %v2820_v0 = vadd.f32 %v4793_v15, %v4792_v39  ;;  %v2824_v63 = vadd.f32 %v4796_v19, %v4795_v37  ;;  %v4798_v3 = vld [vmem:[#allocation76_spill] sm:$0xff]  ;;  %v4799_v28 = vld [vmem:[#allocation111_spill] sm:$0xff]  ;;  %v4801_v2 = vld [vmem:[#allocation77_spill] sm:$0xff] }
  0xc3   :  { %4791 = vst [vmem:[#allocation62_spill] sm:$0xff] %v2816_v1  ;;  %v2828_v5 = vadd.f32 %v4799_v28, %v4798_v3  ;;  %v4802_v6 = vld [vmem:[#allocation112_spill] sm:$0xff]  ;;  %v4804_v29 = vld [vmem:[#allocation78_spill] sm:$0xff]  ;;  %v4805_v9 = vld [vmem:[#allocation113_spill] sm:$0xff] }
  0xc4   :  { %4794 = vst [vmem:[#allocation63_spill] sm:$0xff] %v2820_v0  ;;  %4797 = vst [vmem:[#allocation64_spill] sm:$0xff] %v2824_v63  ;;  %v2832_v7 = vadd.f32 %v4802_v6, %v4801_v2  ;;  %v2836_v8 = vadd.f32 %v4805_v9, %v4804_v29  ;;  %v4807_v49 = vld [vmem:[#allocation79_spill] sm:$0xff]  ;;  %v4808_v1 = vld [vmem:[#allocation114_spill] sm:$0xff] }
  0xc5   :  { %4800 = vst [vmem:[#allocation65_spill] sm:$0xff] %v2828_v5  ;;  %v2840_v39 = vadd.f32 %v4808_v1, %v4807_v49  ;;  %v4810_v15 = vld [vmem:[#allocation80_spill] sm:$0xff]  ;;  %v4811_v0 = vld [vmem:[#allocation115_spill] sm:$0xff]  ;;  %v4813_v19 = vld [vmem:[#allocation81_spill] sm:$0xff] }
  0xc6   :  { %4803 = vst [vmem:[#allocation100_spill] sm:$0xff] %v2832_v7  ;;  %4806 = vst [vmem:[#allocation66_spill] sm:$0xff] %v2836_v8  ;;  %v2844_v37 = vadd.f32 %v4811_v0, %v4810_v15  ;;  %v4814_v63 = vld [vmem:[#allocation116_spill] sm:$0xff]  ;;  %v4816_v28 = vld [vmem:[#allocation82_spill] sm:$0xff] }
  0xc7   :  { %4809 = vst [vmem:[#allocation101_spill] sm:$0xff] %v2840_v39  ;;  %v2848_v3 = vadd.f32 %v4814_v63, %v4813_v19  ;;  %v2852_v2 = vadd.f32 %v2604_v40, %v4816_v28  ;;  %v4818_v6 = vld [vmem:[#allocation10_spill] sm:$0xff]  ;;  %v4820_v29 = vld [vmem:[#allocation84_spill] sm:$0xff]  ;;  %v4822_v49 = vld [vmem:[#allocation11_spill] sm:$0xff] }
  0xc8   :  { %4812 = vst [vmem:[#allocation67_spill] sm:$0xff] %v2844_v37  ;;  %v2856_v9 = vadd.f32 %v2607_v41, %v4818_v6  ;;  %v2860_v1 = vadd.f32 %v2610_v61, %v4820_v29  ;;  %v2864_v0 = vadd.f32 %v2613_v18, %v4822_v49  ;;  %v4824_v15 = vld [vmem:[#allocation12_spill] sm:$0xff]  ;;  %v4826_v19 = vld [vmem:[#allocation85_spill] sm:$0xff]  ;;  %v4828_v28 = vld [vmem:[#allocation86_spill] sm:$0xff]  ;;  %v1611_v6 = vpop.permute.xlu0 %1610 }
  0xc9   :  { %4815 = vst [vmem:[#allocation102_spill] sm:$0xff] %v2848_v3  ;;  %4817 = vst [vmem:[#allocation68_spill] sm:$0xff] %v2852_v2  ;;  %v2868_v63 = vadd.f32 %v2616_v62, %v4824_v15  ;;  %v2872_v40 = vadd.f32 %v2619_v60, %v4826_v19  ;;  %v2876_v41 = vadd.f32 %v2622_v59, %v4828_v28  ;;  %v4832_v29 = vld [vmem:[#allocation89_spill] sm:$0xff]  ;;  %v4834_v49 = vld [vmem:[#allocation90_spill] sm:$0xff] }
  0xca   :  { %4819 = vst [vmem:[#allocation103_spill] sm:$0xff] %v2856_v9  ;;  %4821 = vst [vmem:[#allocation69_spill] sm:$0xff] %v2860_v1  ;;  %v4830_v9 = vld [vmem:[#allocation88_spill] sm:$0xff]  ;;  %v2884_v18 = vadd.f32 %v2630_v26, %v4832_v29  ;;  %v2888_v62 = vadd.f32 %v2633_v27, %v4834_v49  ;;  %v4836_v15 = vld [vmem:[#allocation91_spill] sm:$0xff] }
  0xcb   :  { %4823 = vst [vmem:[#allocation104_spill] sm:$0xff] %v2864_v0  ;;  %4825 = vst [vmem:[#allocation70_spill] sm:$0xff] %v2868_v63  ;;  %v2880_v61 = vadd.f32 %v2627_v25, %v4830_v9  ;;  %v2892_v60 = vadd.f32 %v2636_v30, %v4836_v15  ;;  %v4838_v19 = vld [vmem:[#allocation93_spill] sm:$0xff]  ;;  %v4840_v28 = vld [vmem:[#allocation94_spill] sm:$0xff] }
  0xcc   :  { %4827 = vst [vmem:[#allocation105_spill] sm:$0xff] %v2872_v40  ;;  %4829 = vst [vmem:[#allocation71_spill] sm:$0xff] %v2876_v41  ;;  %v2896_v59 = vadd.f32 %v2639_v43, %v4838_v19  ;;  %v2900_v25 = vadd.f32 %v2642_v33, %v4840_v28  ;;  %v4842_v9 = vld [vmem:[#allocation95_spill] sm:$0xff]  ;;  %v4844_v29 = vld [vmem:[#allocation96_spill] sm:$0xff] }
  0xcd   :  { %4831 = vst [vmem:[#allocation106_spill] sm:$0xff] %v2880_v61  ;;  %4833 = vst [vmem:[#allocation73_spill] sm:$0xff] %v2884_v18  ;;  %v2904_v26 = vadd.f32 %v2645_v52, %v4842_v9  ;;  %v2908_v27 = vadd.f32 %v2648_v44, %v4844_v29  ;;  %v4846_v49 = vld [vmem:[#allocation7_spill] sm:$0xff]  ;;  %v4848_v30 = vld [vmem:[#allocation97_spill] sm:$0xff] }
  0xce   :  { %4835 = vst [vmem:[#allocation108_spill] sm:$0xff] %v2888_v62  ;;  %4837 = vst [vmem:[#allocation74_spill] sm:$0xff] %v2892_v60  ;;  %v2911_v62 = vrot.slane %v1611_v6, %v4846_v49  ;;  %v2915_v15 = vadd.f32 %v2651_v45, %v4848_v30  ;;  %v4850_v43 = vld [vmem:[#allocation98_spill] sm:$0xff]  ;;  %v4852_v33 = vld [vmem:[#allocation72_spill] sm:$0xff]  ;;  %v2957_v60 = vpop.permute.xlu1 %933 }
  0xcf   :  { %4839 = vst [vmem:[#allocation109_spill] sm:$0xff] %v2896_v59  ;;  %4841 = vst [vmem:[#allocation75_spill] sm:$0xff] %v2900_v25  ;;  %v2919_v19 = vadd.f32 %v2654_v46, %v4850_v43  ;;  %v4853_v28 = vld [vmem:[#allocation13_spill] sm:$0xff]  ;;  %v4854_v52 = vld [vmem:[#allocation14_spill] sm:$0xff] }
  0xd0   :  { %4843 = vst [vmem:[#allocation110_spill] sm:$0xff] %v2904_v26  ;;  %4845 = vst [vmem:[#allocation76_spill] sm:$0xff] %v2908_v27  ;;  %v2923_v25 = vmul.f32 %v4853_v28, %v4852_v33  ;;  %v2927_v9 = vmul.f32 %v4854_v52, %v4852_v33  ;;  %v4855_v44 = vld [vmem:[#allocation15_spill] sm:$0xff]  ;;  %v4856_v29 = vld [vmem:[#allocation16_spill] sm:$0xff] }
  0xd1   :  { %4847 = vst [vmem:[#allocation111_spill] sm:$0xff] %v2911_v62  ;;  %4849 = vst [vmem:[#allocation77_spill] sm:$0xff] %v2915_v15  ;;  %v2931_v6 = vmul.f32 %v4855_v44, %v4852_v33  ;;  %v2935_v45 = vmul.f32 %v4856_v29, %v4852_v33  ;;  %v4857_v49 = vld [vmem:[#allocation17_spill] sm:$0xff]  ;;  %v4858_v30 = vld [vmem:[#allocation18_spill] sm:$0xff] }
  0xd2   :  { %4851 = vst [vmem:[#allocation112_spill] sm:$0xff] %v2919_v19  ;;  %v2939_v46 = vmul.f32 %v4857_v49, %v4852_v33  ;;  %v2943_v43 = vmul.f32 %v4858_v30, %v4852_v33  ;;  %v4859_v62 = vld [vmem:[#allocation19_spill] sm:$0xff]  ;;  %v4860_v15 = vld [vmem:[#allocation20_spill] sm:$0xff]  ;;  %v4861_v26 = vld [vmem:[#allocation21_spill] sm:$0xff] }
  0xd3   :  { %v2947_v19 = vmul.f32 %v4859_v62, %v4852_v33  ;;  %v2951_v27 = vmul.f32 %v4860_v15, %v4852_v33  ;;  %v2955_v59 = vmul.f32 %v4861_v26, %v4852_v33  ;;  %4862 = vst [vmem:[#allocation78_spill] sm:$0xff] %v2957_v60  ;;  %v4863_v18 = vld [vmem:[#allocation22_spill] sm:$0xff]  ;;  %v4864_v41 = vld [vmem:[#allocation23_spill] sm:$0xff]  ;;  %v4865_v63 = vld [vmem:[#allocation24_spill] sm:$0xff] }
  0xd4   :  { %v2961_v61 = vmul.f32 %v4863_v18, %v4852_v33  ;;  %v2965_v40 = vmul.f32 %v4864_v41, %v4852_v33  ;;  %v2969_v0 = vmul.f32 %v4865_v63, %v4852_v33  ;;  %v4866_v1 = vld [vmem:[#allocation25_spill] sm:$0xff]  ;;  %v4867_v3 = vld [vmem:[#allocation26_spill] sm:$0xff]  ;;  %v4868_v60 = vld [vmem:[#allocation27_spill] sm:$0xff] }
  0xd5   :  { %v2973_v2 = vmul.f32 %v4866_v1, %v4852_v33  ;;  %v2977_v37 = vmul.f32 %v4867_v3, %v4852_v33  ;;  %v2981_v39 = vmul.f32 %v4868_v60, %v4852_v33  ;;  %v4869_v8 = vld [vmem:[#allocation28_spill] sm:$0xff] }
  0xd6   :  { %v2985_v7 = vmul.f32 %v4869_v8, %v4852_v33  ;;  %v4870_v5 = vld [vmem:[#allocation92_spill] sm:$0xff] }
  0xd7   :  { %v2989_v4 = vmul.f32 %v4853_v28, %v4870_v5  ;;  %v2993_v56 = vmul.f32 %v4854_v52, %v4870_v5  ;;  %v2997_v10 = vmul.f32 %v4855_v44, %v4870_v5  ;;  %v3001_v31 = vmul.f32 %v4856_v29, %v4870_v5 }
  0xd8   :  { %v3005_v33 = vmul.f32 %v4857_v49, %v4870_v5  ;;  %v3009_v34 = vmul.f32 %v4858_v30, %v4870_v5  ;;  %v3013_v23 = vmul.f32 %v4859_v62, %v4870_v5  ;;  %v3017_v11 = vmul.f32 %v4860_v15, %v4870_v5 }
  0xd9   :  { %4871 = vst [vmem:[#allocation113_spill] sm:$0xff] %v3001_v31  ;;  %v3021_v20 = vmul.f32 %v4861_v26, %v4870_v5  ;;  %v3025_v12 = vmul.f32 %v4863_v18, %v4870_v5 }
  0xda   :  { %4872 = vst [vmem:[#allocation79_spill] sm:$0xff] %v3005_v33  ;;  %4873 = vst [vmem:[#allocation114_spill] sm:$0xff] %v3009_v34  ;;  %v3029_v33 = vmul.f32 %v4864_v41, %v4870_v5  ;;  %v3033_v34 = vmul.f32 %v4865_v63, %v4870_v5 }
  0xdb   :  { %4874 = vst [vmem:[#allocation80_spill] sm:$0xff] %v3013_v23  ;;  %4875 = vst [vmem:[#allocation115_spill] sm:$0xff] %v3017_v11  ;;  %v3037_v23 = vmul.f32 %v4866_v1, %v4870_v5  ;;  %v3041_v11 = vmul.f32 %v4867_v3, %v4870_v5 }
  0xdc   :  { %4876 = vst [vmem:[#allocation81_spill] sm:$0xff] %v3021_v20  ;;  %4877 = vst [vmem:[#allocation116_spill] sm:$0xff] %v3025_v12  ;;  %v3045_v20 = vmul.f32 %v4868_v60, %v4870_v5  ;;  %v3049_v12 = vmul.f32 %v4869_v8, %v4870_v5 }
  0xdd   :  { %4878 = vst [vmem:[#allocation82_spill] sm:$0xff] %v3029_v33  ;;  %4879 = vst [vmem:[#allocation10_spill] sm:$0xff] %v3033_v34  ;;  %v4884_v33 = vld [vmem:[#allocation87_spill] sm:$0xff]  ;;  %v653_v34 = vpop.permute.xlu1 %652 }
  0xde   :  { %4880 = vst [vmem:[#allocation84_spill] sm:$0xff] %v3037_v23  ;;  %4881 = vst [vmem:[#allocation11_spill] sm:$0xff] %v3041_v11  ;;  %v3053_v16 = vmul.f32 %v4853_v28, %v4884_v33  ;;  %v3057_v23 = vmul.f32 %v4854_v52, %v4884_v33  ;;  %v3061_v11 = vmul.f32 %v4855_v44, %v4884_v33 }
  0xdf   :  { %4882 = vst [vmem:[#allocation12_spill] sm:$0xff] %v3045_v20  ;;  %4883 = vst [vmem:[#allocation85_spill] sm:$0xff] %v3049_v12  ;;  %v3065_v20 = vmul.f32 %v4856_v29, %v4884_v33  ;;  %v3069_v5 = vmul.f32 %v4857_v49, %v4884_v33  ;;  %v3077_v12 = vmul.f32 %v4859_v62, %v4884_v33 }
  0xe0   :  { %4885 = vst [vmem:[#allocation86_spill] sm:$0xff] %v3053_v16  ;;  %4886 = vst [vmem:[#allocation88_spill] sm:$0xff] %v3057_v23  ;;  %v3073_v16 = vmul.f32 %v4858_v30, %v4884_v33  ;;  %v3081_v23 = vmul.f32 %v4860_v15, %v4884_v33  ;;  %v3125_v31 = vmul.f32 %v4856_v29, %v653_v34 }
  0xe1   :  { %4887 = vst [vmem:[#allocation89_spill] sm:$0xff] %v3061_v11  ;;  %4888 = vst [vmem:[#allocation90_spill] sm:$0xff] %v3065_v20  ;;  %v3085_v11 = vmul.f32 %v4861_v26, %v4884_v33  ;;  %v3089_v20 = vmul.f32 %v4863_v18, %v4884_v33  ;;  %v3146_v29 = vmul.f32 %v4864_v41, %v653_v34 }
  0xe2   :  { %4889 = vst [vmem:[#allocation91_spill] sm:$0xff] %v3069_v5  ;;  %4890 = vst [vmem:[#allocation93_spill] sm:$0xff] %v3073_v16  ;;  %v3093_v5 = vmul.f32 %v4864_v41, %v4884_v33  ;;  %v3097_v16 = vmul.f32 %v4865_v63, %v4884_v33 }
  0xe3   :  { %4891 = vst [vmem:[#allocation94_spill] sm:$0xff] %v3077_v12  ;;  %4892 = vst [vmem:[#allocation95_spill] sm:$0xff] %v3081_v23  ;;  %v3101_v12 = vmul.f32 %v4866_v1, %v4884_v33  ;;  %v3105_v23 = vmul.f32 %v4867_v3, %v4884_v33  ;;  %v4914_v41 = vld [vmem:[#allocation81_spill] sm:$0xff] }
  0xe4   :  { %4893 = vst [vmem:[#allocation96_spill] sm:$0xff] %v3085_v11  ;;  %4894 = vst [vmem:[#allocation7_spill] sm:$0xff] %v3089_v20  ;;  %v3109_v11 = vmul.f32 %v4868_v60, %v4884_v33  ;;  %v3113_v20 = vmul.f32 %v4869_v8, %v4884_v33  ;;  %v3134_v33 = vmul.f32 %v4859_v62, %v653_v34 }
  0xe5   :  { %4895 = vst [vmem:[#allocation97_spill] sm:$0xff] %v3093_v5  ;;  %4896 = vst [vmem:[#allocation98_spill] sm:$0xff] %v3097_v16  ;;  %v3116_v5 = vmul.f32 %v4853_v28, %v653_v34  ;;  %v3119_v16 = vmul.f32 %v4854_v52, %v653_v34  ;;  %v3137_v28 = vmul.f32 %v4860_v15, %v653_v34 }
  0xe6   :  { %4897 = vst [vmem:[#allocation72_spill] sm:$0xff] %v3101_v12  ;;  %4898 = vst [vmem:[#allocation13_spill] sm:$0xff] %v3105_v23  ;;  %v3122_v12 = vmul.f32 %v4855_v44, %v653_v34  ;;  %v3128_v23 = vmul.f32 %v4857_v49, %v653_v34  ;;  %v3140_v52 = vmul.f32 %v4861_v26, %v653_v34 }
  0xe7   :  { %4899 = vst [vmem:[#allocation14_spill] sm:$0xff] %v3109_v11  ;;  %v3131_v11 = vmul.f32 %v4858_v30, %v653_v34  ;;  %v3143_v44 = vmul.f32 %v4863_v18, %v653_v34  ;;  %v3149_v49 = vmul.f32 %v4865_v63, %v653_v34  ;;  %v3152_v30 = vmul.f32 %v4866_v1, %v653_v34 }
  0xe8   :  { %v3155_v62 = vmul.f32 %v4867_v3, %v653_v34  ;;  %v3158_v15 = vmul.f32 %v4868_v60, %v653_v34  ;;  %v3161_v26 = vmul.f32 %v4869_v8, %v653_v34  ;;  %v3165_v18 = vadd.f32 %v2923_v25, %v2658_v47  ;;  %v4900_v8 = vld [vmem:[#allocation113_spill] sm:$0xff]  ;;  %v4917_v60 = vld [vmem:[#allocation116_spill] sm:$0xff] }
  0xe9   :  { %v3169_v63 = vadd.f32 %v2927_v9, %v2662_v48  ;;  %v3173_v1 = vadd.f32 %v2931_v6, %v2666_v55  ;;  %v3177_v3 = vadd.f32 %v2935_v45, %v2670_v54  ;;  %v3181_v34 = vadd.f32 %v2939_v46, %v2674_v22  ;;  %v4919_v25 = vld [vmem:[#allocation49_spill] sm:$0xff]  ;;  %v4922_v9 = vld [vmem:[#allocation50_spill] sm:$0xff]  ;;  %v4925_v46 = vld [vmem:[#allocation51_spill] sm:$0xff] }
  0xea   :  { %v3185_v47 = vadd.f32 %v2943_v43, %v2678_v50  ;;  %v3189_v48 = vadd.f32 %v2947_v19, %v2684_v51  ;;  %v3193_v55 = vadd.f32 %v2951_v27, %v2688_v24  ;;  %v3197_v54 = vadd.f32 %v2955_v59, %v2692_v21  ;;  %v4920_v27 = vld [vmem:[#allocation82_spill] sm:$0xff]  ;;  %v4926_v43 = vld [vmem:[#allocation84_spill] sm:$0xff] }
  0xeb   :  { %v3201_v22 = vadd.f32 %v2961_v61, %v2696_v13  ;;  %v3205_v50 = vadd.f32 %v2965_v40, %v2700_v32  ;;  %v3209_v51 = vadd.f32 %v2969_v0, %v2704_v53  ;;  %v3213_v24 = vadd.f32 %v2973_v2, %v2708_v58  ;;  %v4905_v2 = vld [vmem:[#allocation114_spill] sm:$0xff]  ;;  %v4908_v0 = vld [vmem:[#allocation80_spill] sm:$0xff]  ;;  %v4911_v40 = vld [vmem:[#allocation115_spill] sm:$0xff] }
  0xec   :  { %v3217_v21 = vadd.f32 %v2977_v37, %v2712_v57  ;;  %v3221_v13 = vadd.f32 %v2981_v39, %v2716_v36  ;;  %v3225_v32 = vadd.f32 %v2985_v7, %v2720_v17  ;;  %v3229_v53 = vadd.f32 %v2989_v4, %v2724_v35  ;;  %v4901_v39 = vld [vmem:[#allocation83_spill] sm:$0xff]  ;;  %v4904_v7 = vld [vmem:[#allocation45_spill] sm:$0xff]  ;;  %v4907_v4 = vld [vmem:[#allocation46_spill] sm:$0xff] }
  0xed   :  { %v3233_v58 = vadd.f32 %v2993_v56, %v2728_v38  ;;  %v3237_v57 = vadd.f32 %v2997_v10, %v2732_v42  ;;  %v3241_v36 = vadd.f32 %v4900_v8, %v2736_v14  ;;  %v4902_v37 = vld [vmem:[#allocation79_spill] sm:$0xff]  ;;  %v3249_v35 = vadd.f32 %v4905_v2, %v4904_v7  ;;  %v4910_v56 = vld [vmem:[#allocation9_spill] sm:$0xff]  ;;  %v4916_v61 = vld [vmem:[#allocation48_spill] sm:$0xff] }
  0xee   :  { %v3245_v17 = vadd.f32 %v4902_v37, %v4901_v39  ;;  %v3253_v38 = vadd.f32 %v4908_v0, %v4907_v4  ;;  %v3257_v42 = vadd.f32 %v4911_v40, %v4910_v56  ;;  %v4913_v10 = vld [vmem:[#allocation47_spill] sm:$0xff]  ;;  %v3265_v59 = vadd.f32 %v4917_v60, %v4916_v61  ;;  %v4923_v6 = vld [vmem:[#allocation10_spill] sm:$0xff]  ;;  %v4928_v39 = vld [vmem:[#allocation52_spill] sm:$0xff] }
  0xef   :  { %4906 = vst [vmem:[#allocation16_spill] sm:$0xff] %v3249_v35  ;;  %v3261_v14 = vadd.f32 %v4914_v41, %v4913_v10  ;;  %v3269_v19 = vadd.f32 %v4920_v27, %v4919_v25  ;;  %v3273_v45 = vadd.f32 %v4923_v6, %v4922_v9  ;;  %v3277_v8 = vadd.f32 %v4926_v43, %v4925_v46  ;;  %v4929_v37 = vld [vmem:[#allocation11_spill] sm:$0xff]  ;;  %v4931_v2 = vld [vmem:[#allocation53_spill] sm:$0xff]  ;;  %v4932_v4 = vld [vmem:[#allocation12_spill] sm:$0xff] }
  0xf0   :  { %4903 = vst [vmem:[#allocation15_spill] sm:$0xff] %v3245_v17  ;;  %4909 = vst [vmem:[#allocation17_spill] sm:$0xff] %v3253_v38  ;;  %v3281_v7 = vadd.f32 %v4929_v37, %v4928_v39  ;;  %v3285_v0 = vadd.f32 %v4932_v4, %v4931_v2  ;;  %v4934_v56 = vld [vmem:[#allocation54_spill] sm:$0xff]  ;;  %v4935_v40 = vld [vmem:[#allocation85_spill] sm:$0xff] }
  0xf1   :  { %4912 = vst [vmem:[#allocation18_spill] sm:$0xff] %v3257_v42  ;;  %4915 = vst [vmem:[#allocation19_spill] sm:$0xff] %v3261_v14  ;;  %v3289_v10 = vadd.f32 %v4935_v40, %v4934_v56  ;;  %v4937_v41 = vld [vmem:[#allocation55_spill] sm:$0xff]  ;;  %v4938_v61 = vld [vmem:[#allocation86_spill] sm:$0xff] }
  0xf2   :  { %4918 = vst [vmem:[#allocation20_spill] sm:$0xff] %v3265_v59  ;;  %4921 = vst [vmem:[#allocation21_spill] sm:$0xff] %v3269_v19  ;;  %v3293_v60 = vadd.f32 %v4938_v61, %v4937_v41  ;;  %v4940_v25 = vld [vmem:[#allocation56_spill] sm:$0xff]  ;;  %v4943_v6 = vld [vmem:[#allocation57_spill] sm:$0xff] }
  0xf3   :  { %4924 = vst [vmem:[#allocation22_spill] sm:$0xff] %v3273_v45  ;;  %4927 = vst [vmem:[#allocation23_spill] sm:$0xff] %v3277_v8  ;;  %v4941_v27 = vld [vmem:[#allocation88_spill] sm:$0xff]  ;;  %v4944_v46 = vld [vmem:[#allocation89_spill] sm:$0xff] }
  0xf4   :  { %4930 = vst [vmem:[#allocation24_spill] sm:$0xff] %v3281_v7  ;;  %4933 = vst [vmem:[#allocation25_spill] sm:$0xff] %v3285_v0  ;;  %v3297_v9 = vadd.f32 %v4941_v27, %v4940_v25  ;;  %v3301_v43 = vadd.f32 %v4944_v46, %v4943_v6  ;;  %v4946_v39 = vld [vmem:[#allocation58_spill] sm:$0xff]  ;;  %v4949_v4 = vld [vmem:[#allocation59_spill] sm:$0xff] }
  0xf5   :  { %4936 = vst [vmem:[#allocation26_spill] sm:$0xff] %v3289_v10  ;;  %4939 = vst [vmem:[#allocation27_spill] sm:$0xff] %v3293_v60  ;;  %v4947_v37 = vld [vmem:[#allocation90_spill] sm:$0xff]  ;;  %v4950_v0 = vld [vmem:[#allocation91_spill] sm:$0xff] }
  0xf6   :  { %4942 = vst [vmem:[#allocation28_spill] sm:$0xff] %v3297_v9  ;;  %4945 = vst [vmem:[#allocation92_spill] sm:$0xff] %v3301_v43  ;;  %v3305_v2 = vadd.f32 %v4947_v37, %v4946_v39  ;;  %v3309_v56 = vadd.f32 %v4950_v0, %v4949_v4  ;;  %v4952_v40 = vld [vmem:[#allocation60_spill] sm:$0xff]  ;;  %v4953_v10 = vld [vmem:[#allocation93_spill] sm:$0xff] }
  0xf7   :  { %v3313_v41 = vadd.f32 %v4953_v10, %v4952_v40  ;;  %v4955_v61 = vld [vmem:[#allocation62_spill] sm:$0xff]  ;;  %v4958_v27 = vld [vmem:[#allocation63_spill] sm:$0xff]  ;;  %v4961_v46 = vld [vmem:[#allocation64_spill] sm:$0xff] }
  0xf8   :  { %4948 = vst [vmem:[#allocation87_spill] sm:$0xff] %v3305_v2  ;;  %4951 = vst [vmem:[#allocation113_spill] sm:$0xff] %v3309_v56  ;;  %v4956_v60 = vld [vmem:[#allocation94_spill] sm:$0xff]  ;;  %v4959_v9 = vld [vmem:[#allocation95_spill] sm:$0xff] }
  0xf9   :  { %4954 = vst [vmem:[#allocation83_spill] sm:$0xff] %v3313_v41  ;;  %v3317_v25 = vadd.f32 %v4956_v60, %v4955_v61  ;;  %v3321_v6 = vadd.f32 %v4959_v9, %v4958_v27  ;;  %v4962_v43 = vld [vmem:[#allocation96_spill] sm:$0xff]  ;;  %v4964_v37 = vld [vmem:[#allocation65_spill] sm:$0xff]  ;;  %v4965_v2 = vld [vmem:[#allocation7_spill] sm:$0xff] }
  0xfa   :  { %v3325_v39 = vadd.f32 %v4962_v43, %v4961_v46  ;;  %v3329_v0 = vadd.f32 %v4965_v2, %v4964_v37  ;;  %v4967_v4 = vld [vmem:[#allocation100_spill] sm:$0xff]  ;;  %v4968_v56 = vld [vmem:[#allocation97_spill] sm:$0xff]  ;;  %v4970_v40 = vld [vmem:[#allocation66_spill] sm:$0xff] }
  0xfb   :  { %4957 = vst [vmem:[#allocation79_spill] sm:$0xff] %v3317_v25  ;;  %4960 = vst [vmem:[#allocation45_spill] sm:$0xff] %v3321_v6  ;;  %v3333_v10 = vadd.f32 %v4968_v56, %v4967_v4  ;;  %v4971_v41 = vld [vmem:[#allocation98_spill] sm:$0xff]  ;;  %v4973_v61 = vld [vmem:[#allocation101_spill] sm:$0xff] }
  0xfc   :  { %4963 = vst [vmem:[#allocation114_spill] sm:$0xff] %v3325_v39  ;;  %4966 = vst [vmem:[#allocation46_spill] sm:$0xff] %v3329_v0  ;;  %v3337_v60 = vadd.f32 %v4971_v41, %v4970_v40  ;;  %v4974_v25 = vld [vmem:[#allocation72_spill] sm:$0xff]  ;;  %v4976_v27 = vld [vmem:[#allocation67_spill] sm:$0xff] }
  0xfd   :  { %4969 = vst [vmem:[#allocation80_spill] sm:$0xff] %v3333_v10  ;;  %v3341_v9 = vadd.f32 %v4974_v25, %v4973_v61  ;;  %v4977_v6 = vld [vmem:[#allocation13_spill] sm:$0xff]  ;;  %v4979_v46 = vld [vmem:[#allocation102_spill] sm:$0xff]  ;;  %v4982_v37 = vld [vmem:[#allocation68_spill] sm:$0xff] }
  0xfe   :  { %4972 = vst [vmem:[#allocation9_spill] sm:$0xff] %v3337_v60  ;;  %v3345_v43 = vadd.f32 %v4977_v6, %v4976_v27  ;;  %v4980_v39 = vld [vmem:[#allocation14_spill] sm:$0xff]  ;;  %v3353_v56 = vadd.f32 %v3113_v20, %v4982_v37  ;;  %v4984_v4 = vld [vmem:[#allocation103_spill] sm:$0xff]  ;;  %v4986_v40 = vld [vmem:[#allocation69_spill] sm:$0xff] }
  0xff   :  { %4975 = vst [vmem:[#allocation115_spill] sm:$0xff] %v3341_v9  ;;  %v3349_v2 = vadd.f32 %v4980_v39, %v4979_v46  ;;  %v3357_v41 = vadd.f32 %v3116_v5, %v4984_v4  ;;  %v3361_v25 = vadd.f32 %v3119_v16, %v4986_v40  ;;  %v4988_v61 = vld [vmem:[#allocation104_spill] sm:$0xff]  ;;  %v4990_v27 = vld [vmem:[#allocation70_spill] sm:$0xff]  ;;  %v4992_v46 = vld [vmem:[#allocation105_spill] sm:$0xff] }
 0x100   :  { %4978 = vst [vmem:[#allocation47_spill] sm:$0xff] %v3345_v43  ;;  %4983 = vst [vmem:[#allocation48_spill] sm:$0xff] %v3353_v56  ;;  %v3365_v6 = vadd.f32 %v3122_v12, %v4988_v61  ;;  %v3369_v39 = vadd.f32 %v3125_v31, %v4990_v27  ;;  %v3373_v20 = vadd.f32 %v3128_v23, %v4992_v46  ;;  %v4994_v37 = vld [vmem:[#allocation71_spill] sm:$0xff]  ;;  %v4996_v4 = vld [vmem:[#allocation106_spill] sm:$0xff] }
 0x101   :  { %4981 = vst [vmem:[#allocation81_spill] sm:$0xff] %v3349_v2  ;;  %4985 = vst [vmem:[#allocation116_spill] sm:$0xff] %v3357_v41  ;;  %v3377_v5 = vadd.f32 %v3131_v11, %v4994_v37  ;;  %v3381_v16 = vadd.f32 %v3134_v33, %v4996_v4  ;;  %v4998_v40 = vld [vmem:[#allocation73_spill] sm:$0xff]  ;;  %v5000_v61 = vld [vmem:[#allocation108_spill] sm:$0xff] }
 0x102   :  { %4987 = vst [vmem:[#allocation49_spill] sm:$0xff] %v3361_v25  ;;  %4989 = vst [vmem:[#allocation82_spill] sm:$0xff] %v3365_v6  ;;  %v3385_v12 = vadd.f32 %v3137_v28, %v4998_v40  ;;  %v3389_v31 = vadd.f32 %v3140_v52, %v5000_v61  ;;  %v5002_v27 = vld [vmem:[#allocation74_spill] sm:$0xff]  ;;  %v5004_v46 = vld [vmem:[#allocation109_spill] sm:$0xff] }
 0x103   :  { %4991 = vst [vmem:[#allocation50_spill] sm:$0xff] %v3369_v39  ;;  %4993 = vst [vmem:[#allocation10_spill] sm:$0xff] %v3373_v20  ;;  %v3393_v23 = vadd.f32 %v3143_v44, %v5002_v27  ;;  %v3397_v11 = vadd.f32 %v3146_v29, %v5004_v46  ;;  %v5006_v37 = vld [vmem:[#allocation75_spill] sm:$0xff]  ;;  %v5008_v4 = vld [vmem:[#allocation110_spill] sm:$0xff] }
 0x104   :  { %4995 = vst [vmem:[#allocation51_spill] sm:$0xff] %v3377_v5  ;;  %4997 = vst [vmem:[#allocation84_spill] sm:$0xff] %v3381_v16  ;;  %v3401_v33 = vadd.f32 %v3149_v49, %v5006_v37  ;;  %v3405_v28 = vadd.f32 %v3152_v30, %v5008_v4  ;;  %v5010_v40 = vld [vmem:[#allocation76_spill] sm:$0xff]  ;;  %v5012_v61 = vld [vmem:[#allocation77_spill] sm:$0xff] }
 0x105   :  { %4999 = vst [vmem:[#allocation52_spill] sm:$0xff] %v3385_v12  ;;  %5001 = vst [vmem:[#allocation11_spill] sm:$0xff] %v3389_v31  ;;  %v3409_v52 = vadd.f32 %v3155_v62, %v5010_v40  ;;  %v3413_v44 = vadd.f32 %v3158_v15, %v5012_v61  ;;  %v5014_v27 = vld [vmem:[#allocation112_spill] sm:$0xff]  ;;  %v5016_v46 = vld [vmem:[#allocation78_spill] sm:$0xff] }
 0x106   :  { %5003 = vst [vmem:[#allocation53_spill] sm:$0xff] %v3393_v23  ;;  %5005 = vst [vmem:[#allocation12_spill] sm:$0xff] %v3397_v11  ;;  %v3417_v29 = vadd.f32 %v3161_v26, %v5014_v27  ;;  %v5017_v11 = vld [vmem:[#allocation29_spill] sm:$0xff]  ;;  %v5018_v37 = vld [vmem:[#allocation30_spill] sm:$0xff] }
 0x107   :  { %5007 = vst [vmem:[#allocation54_spill] sm:$0xff] %v3401_v33  ;;  %5009 = vst [vmem:[#allocation85_spill] sm:$0xff] %v3405_v28  ;;  %v3421_v49 = vmul.f32 %v5017_v11, %v5016_v46  ;;  %v3425_v30 = vmul.f32 %v5018_v37, %v5016_v46  ;;  %v5019_v4 = vld [vmem:[#allocation31_spill] sm:$0xff]  ;;  %v5020_v40 = vld [vmem:[#allocation32_spill] sm:$0xff] }
 0x108   :  { %5011 = vst [vmem:[#allocation55_spill] sm:$0xff] %v3409_v52  ;;  %5013 = vst [vmem:[#allocation86_spill] sm:$0xff] %v3413_v44  ;;  %v3429_v62 = vmul.f32 %v5019_v4, %v5016_v46  ;;  %v3433_v15 = vmul.f32 %v5020_v40, %v5016_v46  ;;  %v5021_v61 = vld [vmem:[#allocation33_spill] sm:$0xff]  ;;  %v5022_v27 = vld [vmem:[#allocation34_spill] sm:$0xff] }
 0x109   :  { %5015 = vst [vmem:[#allocation56_spill] sm:$0xff] %v3417_v29  ;;  %v3437_v26 = vmul.f32 %v5021_v61, %v5016_v46  ;;  %v3441_v29 = vmul.f32 %v5022_v27, %v5016_v46  ;;  %v5023_v44 = vld [vmem:[#allocation35_spill] sm:$0xff]  ;;  %v5024_v28 = vld [vmem:[#allocation36_spill] sm:$0xff]  ;;  %v5025_v23 = vld [vmem:[#allocation37_spill] sm:$0xff] }
 0x10a   :  { %v3445_v52 = vmul.f32 %v5023_v44, %v5016_v46  ;;  %v3449_v33 = vmul.f32 %v5024_v28, %v5016_v46  ;;  %v3453_v31 = vmul.f32 %v5025_v23, %v5016_v46  ;;  %v5026_v12 = vld [vmem:[#allocation38_spill] sm:$0xff]  ;;  %v5027_v5 = vld [vmem:[#allocation39_spill] sm:$0xff]  ;;  %v5028_v39 = vld [vmem:[#allocation40_spill] sm:$0xff] }
 0x10b   :  { %v3457_v16 = vmul.f32 %v5026_v12, %v5016_v46  ;;  %v3461_v20 = vmul.f32 %v5027_v5, %v5016_v46  ;;  %v3465_v6 = vmul.f32 %v5028_v39, %v5016_v46  ;;  %v5029_v25 = vld [vmem:[#allocation41_spill] sm:$0xff]  ;;  %v5030_v56 = vld [vmem:[#allocation42_spill] sm:$0xff]  ;;  %v5031_v43 = vld [vmem:[#allocation43_spill] sm:$0xff] }
 0x10c   :  { %v3469_v41 = vmul.f32 %v5029_v25, %v5016_v46  ;;  %v3473_v2 = vmul.f32 %v5030_v56, %v5016_v46  ;;  %v3477_v9 = vmul.f32 %v5031_v43, %v5016_v46  ;;  %v5032_v60 = vld [vmem:[#allocation44_spill] sm:$0xff]  ;;  %v5033_v0 = vld [vmem:[#allocation99_spill] sm:$0xff] }
 0x10d   :  { %v3481_v10 = vmul.f32 %v5032_v60, %v5016_v46  ;;  %v3485_v7 = vmul.f32 %v5017_v11, %v5033_v0  ;;  %v3489_v8 = vmul.f32 %v5018_v37, %v5033_v0  ;;  %v3493_v45 = vmul.f32 %v5019_v4, %v5033_v0 }
 0x10e   :  { %v3497_v19 = vmul.f32 %v5020_v40, %v5033_v0  ;;  %v3501_v46 = vmul.f32 %v5021_v61, %v5033_v0  ;;  %v3505_v59 = vmul.f32 %v5022_v27, %v5033_v0  ;;  %v3509_v14 = vmul.f32 %v5023_v44, %v5033_v0 }
 0x10f   :  { %v3513_v42 = vmul.f32 %v5024_v28, %v5033_v0  ;;  %v3517_v38 = vmul.f32 %v5025_v23, %v5033_v0  ;;  %v3521_v35 = vmul.f32 %v5026_v12, %v5033_v0 }
 0x110   :  { %5034 = vst [vmem:[#allocation88_spill] sm:$0xff] %v3497_v19  ;;  %5035 = vst [vmem:[#allocation57_spill] sm:$0xff] %v3501_v46  ;;  %v3525_v46 = vmul.f32 %v5027_v5, %v5033_v0 }
 0x111   :  { %5036 = vst [vmem:[#allocation89_spill] sm:$0xff] %v3505_v59  ;;  %5037 = vst [vmem:[#allocation58_spill] sm:$0xff] %v3509_v14  ;;  %v3529_v59 = vmul.f32 %v5028_v39, %v5033_v0  ;;  %v3533_v14 = vmul.f32 %v5029_v25, %v5033_v0 }
 0x112   :  { %5038 = vst [vmem:[#allocation90_spill] sm:$0xff] %v3513_v42  ;;  %5039 = vst [vmem:[#allocation59_spill] sm:$0xff] %v3517_v38  ;;  %v3537_v42 = vmul.f32 %v5030_v56, %v5033_v0  ;;  %v3541_v38 = vmul.f32 %v5031_v43, %v5033_v0 }
 0x113   :  { %5040 = vst [vmem:[#allocation91_spill] sm:$0xff] %v3521_v35  ;;  %5041 = vst [vmem:[#allocation60_spill] sm:$0xff] %v3525_v46  ;;  %v3545_v35 = vmul.f32 %v5032_v60, %v5033_v0  ;;  %v5047_v46 = vld [vmem:[#allocation107_spill] sm:$0xff] }
 0x114   :  { %5042 = vst [vmem:[#allocation93_spill] sm:$0xff] %v3529_v59  ;;  %5043 = vst [vmem:[#allocation62_spill] sm:$0xff] %v3533_v14  ;;  %v3549_v17 = vmul.f32 %v5017_v11, %v5047_v46  ;;  %v949_v59 = vpop.permute.xlu1 %948  ;;  %v3553_v14 = vmul.f32 %v5018_v37, %v5047_v46  ;;  %v3565_v0 = vmul.f32 %v5021_v61, %v5047_v46 }
 0x115   :  { %5044 = vst [vmem:[#allocation94_spill] sm:$0xff] %v3537_v42  ;;  %5045 = vst [vmem:[#allocation63_spill] sm:$0xff] %v3541_v38  ;;  %v3557_v42 = vmul.f32 %v5019_v4, %v5047_v46  ;;  %v3561_v38 = vmul.f32 %v5020_v40, %v5047_v46  ;;  %v3621_v19 = vmul.f32 %v5020_v40, %v949_v59 }
 0x116   :  { %5046 = vst [vmem:[#allocation95_spill] sm:$0xff] %v3545_v35  ;;  %5048 = vst [vmem:[#allocation64_spill] sm:$0xff] %v3549_v17  ;;  %v3569_v17 = vmul.f32 %v5022_v27, %v5047_v46  ;;  %v3573_v35 = vmul.f32 %v5023_v44, %v5047_v46  ;;  %v3642_v40 = vmul.f32 %v5027_v5, %v949_v59 }
 0x117   :  { %5049 = vst [vmem:[#allocation96_spill] sm:$0xff] %v3553_v14  ;;  %5050 = vst [vmem:[#allocation65_spill] sm:$0xff] %v3557_v42  ;;  %v3577_v14 = vmul.f32 %v5024_v28, %v5047_v46  ;;  %v3581_v42 = vmul.f32 %v5025_v23, %v5047_v46 }
 0x118   :  { %5051 = vst [vmem:[#allocation7_spill] sm:$0xff] %v3561_v38  ;;  %5052 = vst [vmem:[#allocation100_spill] sm:$0xff] %v3565_v0  ;;  %v3585_v38 = vmul.f32 %v5026_v12, %v5047_v46  ;;  %v3589_v0 = vmul.f32 %v5027_v5, %v5047_v46  ;;  %v5074_v5 = vld [vmem:[#allocation20_spill] sm:$0xff] }
 0x119   :  { %5053 = vst [vmem:[#allocation97_spill] sm:$0xff] %v3569_v17  ;;  %5054 = vst [vmem:[#allocation66_spill] sm:$0xff] %v3573_v35  ;;  %v3593_v17 = vmul.f32 %v5028_v39, %v5047_v46  ;;  %v3597_v35 = vmul.f32 %v5029_v25, %v5047_v46 }
 0x11a   :  { %5055 = vst [vmem:[#allocation98_spill] sm:$0xff] %v3577_v14  ;;  %5056 = vst [vmem:[#allocation101_spill] sm:$0xff] %v3581_v42  ;;  %v3601_v14 = vmul.f32 %v5030_v56, %v5047_v46  ;;  %v3605_v42 = vmul.f32 %v5031_v43, %v5047_v46 }
 0x11b   :  { %5057 = vst [vmem:[#allocation72_spill] sm:$0xff] %v3585_v38  ;;  %5058 = vst [vmem:[#allocation67_spill] sm:$0xff] %v3589_v0  ;;  %v3609_v38 = vmul.f32 %v5032_v60, %v5047_v46  ;;  %v3612_v0 = vmul.f32 %v5017_v11, %v949_v59  ;;  %v3630_v46 = vmul.f32 %v5023_v44, %v949_v59 }
 0x11c   :  { %5059 = vst [vmem:[#allocation13_spill] sm:$0xff] %v3593_v17  ;;  %5060 = vst [vmem:[#allocation102_spill] sm:$0xff] %v3597_v35  ;;  %v3615_v17 = vmul.f32 %v5018_v37, %v949_v59  ;;  %v3618_v35 = vmul.f32 %v5019_v4, %v949_v59  ;;  %v3633_v11 = vmul.f32 %v5024_v28, %v949_v59 }
 0x11d   :  { %5061 = vst [vmem:[#allocation14_spill] sm:$0xff] %v3601_v14  ;;  %5062 = vst [vmem:[#allocation68_spill] sm:$0xff] %v3605_v42  ;;  %v3624_v14 = vmul.f32 %v5021_v61, %v949_v59  ;;  %v3627_v42 = vmul.f32 %v5022_v27, %v949_v59  ;;  %v3636_v37 = vmul.f32 %v5025_v23, %v949_v59 }
 0x11e   :  { %v3639_v4 = vmul.f32 %v5026_v12, %v949_v59  ;;  %v3645_v61 = vmul.f32 %v5028_v39, %v949_v59  ;;  %v3648_v27 = vmul.f32 %v5029_v25, %v949_v59  ;;  %v3651_v44 = vmul.f32 %v5030_v56, %v949_v59 }
 0x11f   :  { %v3654_v28 = vmul.f32 %v5031_v43, %v949_v59  ;;  %v3657_v23 = vmul.f32 %v5032_v60, %v949_v59  ;;  %v3661_v12 = vadd.f32 %v3421_v49, %v3165_v18  ;;  %v3665_v39 = vadd.f32 %v3425_v30, %v3169_v63  ;;  %v5063_v60 = vld [vmem:[#allocation88_spill] sm:$0xff]  ;;  %v5065_v43 = vld [vmem:[#allocation57_spill] sm:$0xff]  ;;  %v5078_v49 = vld [vmem:[#allocation22_spill] sm:$0xff] }
 0x120   :  { %v3669_v25 = vadd.f32 %v3429_v62, %v3173_v1  ;;  %v3673_v56 = vadd.f32 %v3433_v15, %v3177_v3  ;;  %v3677_v59 = vadd.f32 %v3437_v26, %v3181_v34  ;;  %v3681_v18 = vadd.f32 %v3441_v29, %v3185_v47  ;;  %v5079_v30 = vld [vmem:[#allocation93_spill] sm:$0xff]  ;;  %v5080_v15 = vld [vmem:[#allocation23_spill] sm:$0xff]  ;;  %v5081_v26 = vld [vmem:[#allocation62_spill] sm:$0xff] }
 0x121   :  { %v3685_v63 = vadd.f32 %v3445_v52, %v3189_v48  ;;  %v3689_v1 = vadd.f32 %v3449_v33, %v3193_v55  ;;  %v3693_v3 = vadd.f32 %v3453_v31, %v3197_v54  ;;  %v3697_v34 = vadd.f32 %v3457_v16, %v3201_v22  ;;  %v5075_v16 = vld [vmem:[#allocation91_spill] sm:$0xff]  ;;  %v5076_v33 = vld [vmem:[#allocation21_spill] sm:$0xff]  ;;  %v5077_v52 = vld [vmem:[#allocation60_spill] sm:$0xff] }
 0x122   :  { %v3701_v47 = vadd.f32 %v3461_v20, %v3205_v50  ;;  %v3705_v48 = vadd.f32 %v3465_v6, %v3209_v51  ;;  %v3709_v55 = vadd.f32 %v3469_v41, %v3213_v24  ;;  %v3713_v54 = vadd.f32 %v3473_v2, %v3217_v21  ;;  %v5067_v2 = vld [vmem:[#allocation89_spill] sm:$0xff]  ;;  %v5069_v41 = vld [vmem:[#allocation58_spill] sm:$0xff]  ;;  %v5073_v20 = vld [vmem:[#allocation59_spill] sm:$0xff] }
 0x123   :  { %v3717_v22 = vadd.f32 %v3477_v9, %v3221_v13  ;;  %v3721_v50 = vadd.f32 %v3481_v10, %v3225_v32  ;;  %v3725_v51 = vadd.f32 %v3485_v7, %v3229_v53  ;;  %v3729_v24 = vadd.f32 %v3489_v8, %v3233_v58  ;;  %v5064_v9 = vld [vmem:[#allocation15_spill] sm:$0xff]  ;;  %v5066_v10 = vld [vmem:[#allocation16_spill] sm:$0xff]  ;;  %v5068_v7 = vld [vmem:[#allocation17_spill] sm:$0xff] }
 0x124   :  { %v3733_v21 = vadd.f32 %v3493_v45, %v3237_v57  ;;  %v3737_v13 = vadd.f32 %v5063_v60, %v3241_v36  ;;  %v3741_v32 = vadd.f32 %v5065_v43, %v5064_v9  ;;  %v3745_v53 = vadd.f32 %v5067_v2, %v5066_v10  ;;  %v5070_v8 = vld [vmem:[#allocation18_spill] sm:$0xff]  ;;  %v5072_v45 = vld [vmem:[#allocation19_spill] sm:$0xff]  ;;  %v5082_v9 = vld [vmem:[#allocation24_spill] sm:$0xff] }
 0x125   :  { %v3749_v58 = vadd.f32 %v5069_v41, %v5068_v7  ;;  %v5071_v6 = vld [vmem:[#allocation90_spill] sm:$0xff]  ;;  %v3757_v36 = vadd.f32 %v5073_v20, %v5072_v45  ;;  %v3761_v31 = vadd.f32 %v5075_v16, %v5074_v5  ;;  %v3765_v29 = vadd.f32 %v5077_v52, %v5076_v33  ;;  %v5084_v2 = vld [vmem:[#allocation25_spill] sm:$0xff]  ;;  %v5085_v7 = vld [vmem:[#allocation63_spill] sm:$0xff] }
 0x126   :  { %v3753_v57 = vadd.f32 %v5071_v6, %v5070_v8  ;;  %v3769_v62 = vadd.f32 %v5079_v30, %v5078_v49  ;;  %v3773_v60 = vadd.f32 %v5081_v26, %v5080_v15  ;;  %v5083_v43 = vld [vmem:[#allocation94_spill] sm:$0xff]  ;;  %v3781_v41 = vadd.f32 %v5085_v7, %v5084_v2  ;;  %v5088_v6 = vld [vmem:[#allocation95_spill] sm:$0xff]  ;;  %v5091_v5 = vld [vmem:[#allocation64_spill] sm:$0xff] }
 0x127   :  { %v3777_v10 = vadd.f32 %v5083_v43, %v5082_v9  ;;  %v5087_v8 = vld [vmem:[#allocation26_spill] sm:$0xff]  ;;  %v5090_v20 = vld [vmem:[#allocation27_spill] sm:$0xff]  ;;  %v5093_v33 = vld [vmem:[#allocation28_spill] sm:$0xff] }
 0x128   :  { %5086 = vst [vmem:[#allocation103_spill] sm:$0xff] %v3781_v41  ;;  %v3785_v45 = vadd.f32 %v5088_v6, %v5087_v8  ;;  %v3789_v16 = vadd.f32 %v5091_v5, %v5090_v20  ;;  %v5094_v52 = vld [vmem:[#allocation96_spill] sm:$0xff]  ;;  %v5097_v15 = vld [vmem:[#allocation65_spill] sm:$0xff]  ;;  %v5099_v9 = vld [vmem:[#allocation87_spill] sm:$0xff] }
 0x129   :  { %v3793_v49 = vadd.f32 %v5094_v52, %v5093_v33  ;;  %v5096_v30 = vld [vmem:[#allocation92_spill] sm:$0xff]  ;;  %v5100_v43 = vld [vmem:[#allocation7_spill] sm:$0xff]  ;;  %v5102_v7 = vld [vmem:[#allocation113_spill] sm:$0xff] }
 0x12a   :  { %5089 = vst [vmem:[#allocation69_spill] sm:$0xff] %v3785_v45  ;;  %5092 = vst [vmem:[#allocation104_spill] sm:$0xff] %v3789_v16  ;;  %v3797_v26 = vadd.f32 %v5097_v15, %v5096_v30  ;;  %v3801_v2 = vadd.f32 %v5100_v43, %v5099_v9  ;;  %v5103_v41 = vld [vmem:[#allocation100_spill] sm:$0xff]  ;;  %v5105_v6 = vld [vmem:[#allocation83_spill] sm:$0xff] }
 0x12b   :  { %5095 = vst [vmem:[#allocation70_spill] sm:$0xff] %v3793_v49  ;;  %v3805_v8 = vadd.f32 %v5103_v41, %v5102_v7  ;;  %v5106_v45 = vld [vmem:[#allocation97_spill] sm:$0xff]  ;;  %v5108_v5 = vld [vmem:[#allocation79_spill] sm:$0xff]  ;;  %v5109_v16 = vld [vmem:[#allocation66_spill] sm:$0xff] }
 0x12c   :  { %5098 = vst [vmem:[#allocation105_spill] sm:$0xff] %v3797_v26  ;;  %5101 = vst [vmem:[#allocation71_spill] sm:$0xff] %v3801_v2  ;;  %v3809_v20 = vadd.f32 %v5106_v45, %v5105_v6  ;;  %v3813_v33 = vadd.f32 %v5109_v16, %v5108_v5  ;;  %v5111_v52 = vld [vmem:[#allocation45_spill] sm:$0xff]  ;;  %v5112_v49 = vld [vmem:[#allocation98_spill] sm:$0xff] }
 0x12d   :  { %5104 = vst [vmem:[#allocation106_spill] sm:$0xff] %v3805_v8  ;;  %v3817_v30 = vadd.f32 %v5112_v49, %v5111_v52  ;;  %v5114_v15 = vld [vmem:[#allocation114_spill] sm:$0xff]  ;;  %v5115_v26 = vld [vmem:[#allocation101_spill] sm:$0xff]  ;;  %v5118_v2 = vld [vmem:[#allocation72_spill] sm:$0xff] }
 0x12e   :  { %5107 = vst [vmem:[#allocation73_spill] sm:$0xff] %v3809_v20  ;;  %5110 = vst [vmem:[#allocation108_spill] sm:$0xff] %v3813_v33  ;;  %v3821_v9 = vadd.f32 %v5115_v26, %v5114_v15  ;;  %v5117_v43 = vld [vmem:[#allocation46_spill] sm:$0xff]  ;;  %v5119_v7 = vld [vmem:[#allocation80_spill] sm:$0xff] }
 0x12f   :  { %5113 = vst [vmem:[#allocation74_spill] sm:$0xff] %v3817_v30  ;;  %v3825_v41 = vadd.f32 %v5118_v2, %v5117_v43  ;;  %v5120_v8 = vld [vmem:[#allocation67_spill] sm:$0xff]  ;;  %v5121_v6 = vld [vmem:[#allocation9_spill] sm:$0xff]  ;;  %v5124_v33 = vld [vmem:[#allocation102_spill] sm:$0xff] }
 0x130   :  { %5116 = vst [vmem:[#allocation109_spill] sm:$0xff] %v3821_v9  ;;  %v3829_v45 = vadd.f32 %v5120_v8, %v5119_v7  ;;  %v5122_v20 = vld [vmem:[#allocation13_spill] sm:$0xff]  ;;  %v5123_v5 = vld [vmem:[#allocation115_spill] sm:$0xff]  ;;  %v5126_v30 = vld [vmem:[#allocation14_spill] sm:$0xff] }
 0x131   :  { %v3833_v16 = vadd.f32 %v5122_v20, %v5121_v6  ;;  %v3837_v49 = vadd.f32 %v5124_v33, %v5123_v5  ;;  %v5125_v52 = vld [vmem:[#allocation47_spill] sm:$0xff]  ;;  %v5127_v15 = vld [vmem:[#allocation81_spill] sm:$0xff]  ;;  %v5128_v9 = vld [vmem:[#allocation68_spill] sm:$0xff] }
 0x132   :  { %v3841_v26 = vadd.f32 %v5126_v30, %v5125_v52  ;;  %v3845_v2 = vadd.f32 %v5128_v9, %v5127_v15  ;;  %v5129_v43 = vld [vmem:[#allocation48_spill] sm:$0xff]  ;;  %v5131_v6 = vld [vmem:[#allocation49_spill] sm:$0xff]  ;;  %v5132_v5 = vld [vmem:[#allocation82_spill] sm:$0xff] }
 0x133   :  { %v3849_v8 = vadd.f32 %v3609_v38, %v5129_v43  ;;  %v5130_v7 = vld [vmem:[#allocation116_spill] sm:$0xff]  ;;  %v3857_v33 = vadd.f32 %v3615_v17, %v5131_v6  ;;  %v3861_v30 = vadd.f32 %v3618_v35, %v5132_v5  ;;  %v5133_v52 = vld [vmem:[#allocation50_spill] sm:$0xff]  ;;  %v5135_v43 = vld [vmem:[#allocation51_spill] sm:$0xff] }
 0x134   :  { %v3853_v20 = vadd.f32 %v3612_v0, %v5130_v7  ;;  %v3865_v9 = vadd.f32 %v3621_v19, %v5133_v52  ;;  %v5134_v15 = vld [vmem:[#allocation10_spill] sm:$0xff]  ;;  %v3873_v0 = vadd.f32 %v3627_v42, %v5135_v43  ;;  %v5136_v7 = vld [vmem:[#allocation84_spill] sm:$0xff]  ;;  %v5138_v5 = vld [vmem:[#allocation11_spill] sm:$0xff] }
 0x135   :  { %v3869_v38 = vadd.f32 %v3624_v14, %v5134_v15  ;;  %v3877_v17 = vadd.f32 %v3630_v46, %v5136_v7  ;;  %v5137_v6 = vld [vmem:[#allocation52_spill] sm:$0xff]  ;;  %v3885_v19 = vadd.f32 %v3636_v37, %v5138_v5  ;;  %v5139_v52 = vld [vmem:[#allocation53_spill] sm:$0xff]  ;;  %v5141_v43 = vld [vmem:[#allocation54_spill] sm:$0xff] }
 0x136   :  { %v3881_v35 = vadd.f32 %v3633_v11, %v5137_v6  ;;  %v3889_v14 = vadd.f32 %v3639_v4, %v5139_v52  ;;  %v5140_v15 = vld [vmem:[#allocation12_spill] sm:$0xff]  ;;  %v3897_v46 = vadd.f32 %v3645_v61, %v5141_v43  ;;  %v5142_v7 = vld [vmem:[#allocation85_spill] sm:$0xff]  ;;  %v5143_v6 = vld [vmem:[#allocation55_spill] sm:$0xff]  ;;  %v1235_v43 = vpop.permute.xlu1 %1234 }
 0x137   :  { %v3893_v42 = vadd.f32 %v3642_v40, %v5140_v15  ;;  %v3901_v11 = vadd.f32 %v3648_v27, %v5142_v7  ;;  %v3905_v37 = vadd.f32 %v3651_v44, %v5143_v6  ;;  %v5144_v5 = vld [vmem:[#allocation86_spill] sm:$0xff]  ;;  %v5145_v52 = vld [vmem:[#allocation56_spill] sm:$0xff]  ;;  %v5146_v15 = vld [vmem:[#allocation117_spill] sm:$0xff]  ;;  %v3980_v7 = vadd.f32 %v1235_v43, %v3725_v51 }
 0x138   :  { %v3909_v4 = vadd.f32 %v3654_v28, %v5144_v5  ;;  %v3913_v40 = vadd.f32 %v3657_v23, %v5145_v52  ;;  %v3917_v61 = vadd.f32 %v5146_v15, %v3661_v12  ;;  %v3921_v27 = vadd.f32 %v5146_v15, %v3665_v39 }
 0x139   :  { %v3925_v44 = vadd.f32 %v5146_v15, %v3669_v25  ;;  %v3929_v28 = vadd.f32 %v5146_v15, %v3673_v56  ;;  %v3933_v23 = vadd.f32 %v5146_v15, %v3677_v59  ;;  %v3937_v12 = vadd.f32 %v5146_v15, %v3681_v18 }
 0x13a   :  { %v3941_v39 = vadd.f32 %v5146_v15, %v3685_v63  ;;  %v3945_v25 = vadd.f32 %v5146_v15, %v3689_v1  ;;  %v3949_v56 = vadd.f32 %v5146_v15, %v3693_v3  ;;  %v3953_v59 = vadd.f32 %v5146_v15, %v3697_v34 }
 0x13b   :  { %v3957_v18 = vadd.f32 %v5146_v15, %v3701_v47  ;;  %v3961_v63 = vadd.f32 %v5146_v15, %v3705_v48  ;;  %v3965_v1 = vadd.f32 %v5146_v15, %v3709_v55  ;;  %v3969_v3 = vadd.f32 %v5146_v15, %v3713_v54 }
 0x13c   :  { %v3973_v34 = vadd.f32 %v5146_v15, %v3717_v22  ;;  %v3977_v47 = vadd.f32 %v5146_v15, %v3721_v50  ;;  %v3983_v48 = vadd.f32 %v1235_v43, %v3729_v24  ;;  %v3986_v55 = vadd.f32 %v1235_v43, %v3733_v21  ;;  %v5161_v15 = vld [vmem:[#allocation118_spill] sm:$0xff] }
 0x13d   :  { %v3989_v54 = vadd.f32 %v1235_v43, %v3737_v13  ;;  %v3992_v6 = vadd.f32 %v1235_v43, %v3741_v32  ;;  %v3995_v22 = vadd.f32 %v1235_v43, %v3745_v53  ;;  %v3998_v50 = vadd.f32 %v1235_v43, %v3749_v58 }
 0x13e   :  { %5147 = vst [vmem:[#allocation75_spill] sm:$0xff] %v3977_v47  ;;  %5148 = vst [vmem:[#allocation110_spill] sm:$0xff] %v3983_v48  ;;  %v4001_v51 = vadd.f32 %v1235_v43, %v3753_v57  ;;  %v4004_v24 = vadd.f32 %v1235_v43, %v3757_v36  ;;  %v4007_v21 = vadd.f32 %v1235_v43, %v3761_v31  ;;  %v5156_v57 = vld [vmem:[#allocation103_spill] sm:$0xff]  ;;  %v5158_v36 = vld [vmem:[#allocation69_spill] sm:$0xff] }
 0x13f   :  { %5149 = vst [vmem:[#allocation76_spill] sm:$0xff] %v3989_v54  ;;  %5150 = vst [vmem:[#allocation77_spill] sm:$0xff] %v3995_v22  ;;  %v4010_v13 = vadd.f32 %v1235_v43, %v3765_v29  ;;  %v4013_v32 = vadd.f32 %v1235_v43, %v3769_v62  ;;  %v4016_v53 = vadd.f32 %v1235_v43, %v3773_v60  ;;  %v5160_v31 = vld [vmem:[#allocation104_spill] sm:$0xff]  ;;  %v1245_v29 = vpop.permute.xlu1 %1244  ;;  %v5165_v60 = vld [vmem:[#allocation105_spill] sm:$0xff] }
 0x140   :  { %5151 = vst [vmem:[#allocation112_spill] sm:$0xff] %v3998_v50  ;;  %5152 = vst [vmem:[#allocation78_spill] sm:$0xff] %v4001_v51  ;;  %v4019_v58 = vadd.f32 %v1235_v43, %v3777_v10  ;;  %v4022_v5 = vadd.f32 %v1235_v43, %v5156_v57  ;;  %v4025_v52 = vadd.f32 %v1235_v43, %v5158_v36  ;;  %v5167_v10 = vld [vmem:[#allocation71_spill] sm:$0xff]  ;;  %v5169_v36 = vld [vmem:[#allocation73_spill] sm:$0xff] }
 0x141   :  { %5153 = vst [vmem:[#allocation29_spill] sm:$0xff] %v4007_v21  ;;  %5154 = vst [vmem:[#allocation30_spill] sm:$0xff] %v4010_v13  ;;  %v4029_v21 = vadd.f32 %v5161_v15, %v5160_v31  ;;  %v5163_v13 = vld [vmem:[#allocation70_spill] sm:$0xff]  ;;  %v4041_v57 = vadd.f32 %v5161_v15, %v5167_v10  ;;  %v4049_v31 = vadd.f32 %v5161_v15, %v5169_v36 }
 0x142   :  { %5155 = vst [vmem:[#allocation31_spill] sm:$0xff] %v4016_v53  ;;  %5157 = vst [vmem:[#allocation32_spill] sm:$0xff] %v4022_v5  ;;  %v4033_v62 = vadd.f32 %v5161_v15, %v5163_v13  ;;  %v4037_v53 = vadd.f32 %v5161_v15, %v5165_v60  ;;  %v5168_v5 = vld [vmem:[#allocation106_spill] sm:$0xff]  ;;  %v4069_v36 = vadd.f32 %v5161_v15, %v3829_v45 }
 0x143   :  { %5159 = vst [vmem:[#allocation33_spill] sm:$0xff] %v4025_v52  ;;  %5162 = vst [vmem:[#allocation34_spill] sm:$0xff] %v4029_v21  ;;  %v4045_v43 = vadd.f32 %v5161_v15, %v5168_v5  ;;  %v5170_v21 = vld [vmem:[#allocation108_spill] sm:$0xff]  ;;  %v4065_v5 = vadd.f32 %v5161_v15, %v3825_v41  ;;  %v4085_v41 = vadd.f32 %v5161_v15, %v3845_v2 }
 0x144   :  { %5164 = vst [vmem:[#allocation35_spill] sm:$0xff] %v4033_v62  ;;  %5166 = vst [vmem:[#allocation36_spill] sm:$0xff] %v4037_v53  ;;  %v4053_v13 = vadd.f32 %v5161_v15, %v5170_v21  ;;  %v5171_v62 = vld [vmem:[#allocation74_spill] sm:$0xff]  ;;  %v5172_v53 = vld [vmem:[#allocation109_spill] sm:$0xff]  ;;  %v4073_v21 = vadd.f32 %v5161_v15, %v3833_v16  ;;  %v4089_v45 = vadd.f32 %v5161_v15, %v3849_v8 }
 0x145   :  { %v4057_v60 = vadd.f32 %v5161_v15, %v5171_v62  ;;  %v4061_v10 = vadd.f32 %v5161_v15, %v5172_v53  ;;  %5173 = vst [vmem:[#allocation37_spill] sm:$0xff] %v4069_v36  ;;  %v4077_v62 = vadd.f32 %v5161_v15, %v3837_v49  ;;  %v4081_v53 = vadd.f32 %v5161_v15, %v3841_v26 }
 0x146   :  { %v4092_v36 = vadd.f32 %v1245_v29, %v3853_v20  ;;  %v4095_v16 = vadd.f32 %v1245_v29, %v3857_v33  ;;  %v4098_v49 = vadd.f32 %v1245_v29, %v3861_v30  ;;  %v4101_v26 = vadd.f32 %v1245_v29, %v3865_v9 }
 0x147   :  { %5174 = vst [vmem:[#allocation38_spill] sm:$0xff] %v4081_v53  ;;  %v4104_v53 = vadd.f32 %v1245_v29, %v3869_v38  ;;  %v4107_v2 = vadd.f32 %v1245_v29, %v3873_v0  ;;  %v4110_v8 = vadd.f32 %v1245_v29, %v3877_v17  ;;  %v4113_v20 = vadd.f32 %v1245_v29, %v3881_v35 }
 0x148   :  { %5175 = vst [vmem:[#allocation39_spill] sm:$0xff] %v4095_v16  ;;  %5176 = vst [vmem:[#allocation40_spill] sm:$0xff] %v4101_v26  ;;  %v4116_v33 = vadd.f32 %v1245_v29, %v3885_v19  ;;  %v4119_v30 = vadd.f32 %v1245_v29, %v3889_v14  ;;  %v4122_v9 = vadd.f32 %v1245_v29, %v3893_v42  ;;  %v5182_v14 = vld [vmem:[#allocation29_spill] sm:$0xff]  ;;  %v5183_v47 = vld [vmem:[#allocation30_spill] sm:$0xff]  ;;  %v5198_v15 = vmax.f32 %v3933_v23, 0.0 }
 0x149   :  { %5177 = vst [vmem:[#allocation41_spill] sm:$0xff] %v4110_v8  ;;  %5178 = vst [vmem:[#allocation42_spill] sm:$0xff] %v4113_v20  ;;  %v4125_v38 = vadd.f32 %v1245_v29, %v3897_v46  ;;  %v4128_v0 = vadd.f32 %v1245_v29, %v3901_v11  ;;  %v4131_v17 = vadd.f32 %v1245_v29, %v3905_v37  ;;  %v5184_v48 = vld [vmem:[#allocation31_spill] sm:$0xff]  ;;  %v5185_v54 = vld [vmem:[#allocation32_spill] sm:$0xff]  ;;  %v5193_v11 = vmax.f32 %v3917_v61, 0.0  ;;  %v1387_v20 = vpop.permute.xlu1 %1386 }
 0x14a   :  { %v4134_v35 = vadd.f32 %v1245_v29, %v3909_v4  ;;  %v4137_v19 = vadd.f32 %v1245_v29, %v3913_v40  ;;  %v5186_v22 = vld [vmem:[#allocation34_spill] sm:$0xff]  ;;  %v5194_v8 = vld [vmem:[#allocation8_spill] sm:$0xff]  ;;  %v5195_v37 = vmax.f32 %v3921_v27, 0.0  ;;  %v5197_v29 = vmax.f32 %v3929_v28, 0.0 }
 0x14b   :  { %5179 = vst [vmem:[#allocation43_spill] sm:$0xff] %v4128_v0  ;;  %v5187_v50 = vld [vmem:[#allocation35_spill] sm:$0xff]  ;;  %v5191_v16 = vmov %v4128_v0  ;;  %v1399_v0 = vmul.f32 %v5194_v8, %v5193_v11  ;;  %v1403_v46 = vmul.f32 %v5194_v8, %v5198_v15  ;;  %v5199_v61 = vmax.f32 %v3937_v12, 0.0 }
 0x14c   :  { %5180 = vst [vmem:[#allocation44_spill] sm:$0xff] %v4134_v35  ;;  %5181 = vst [vmem:[#allocation99_spill] sm:$0xff] %v4137_v19  ;;  %v5189_v52 = vld [vmem:[#allocation37_spill] sm:$0xff]  ;;  %v5192_v26 = vmov %v4134_v35  ;;  %v1400_v4 = vmul.f32 %v5194_v8, %v5195_v37  ;;  %v5196_v35 = vmax.f32 %v3925_v44, 0.0  ;;  %v1402_v42 = vmul.f32 %v5194_v8, %v5197_v29 }
 0x14d   :  { %v1404_v11 = vmul.f32 %v5194_v8, %v5199_v61  ;;  %v5200_v27 = vmax.f32 %v3941_v39, 0.0  ;;  %v5201_v44 = vmax.f32 %v3945_v25, 0.0  ;;  %v5202_v28 = vmax.f32 %v3949_v56, 0.0 }
 0x14e   :  { %v5190_v51 = vld [vmem:[#allocation38_spill] sm:$0xff]  ;;  %v1401_v40 = vmul.f32 %v5194_v8, %v5196_v35  ;;  %v5204_v23 = vmax.f32 %v3953_v59, 0.0  ;;  %v5206_v12 = vmax.f32 %v3957_v18, 0.0  ;;  %v5208_v61 = vmax.f32 %v3961_v63, 0.0 }
 0x14f   :  { %v1405_v37 = vmul.f32 %v5194_v8, %v5200_v27  ;;  %v1406_v35 = vmul.f32 %v5194_v8, %v5201_v44  ;;  %v4230_v29 = vmul.f32 %v5194_v8, %v5202_v28  ;;  %v5210_v56 = vmax.f32 %v3965_v1, 0.0 }
 0x150   :  { %v4235_v15 = vmul.f32 %v5194_v8, %v5204_v23  ;;  %v4240_v39 = vmul.f32 %v5194_v8, %v5206_v12  ;;  %v4245_v25 = vmul.f32 %v5194_v8, %v5208_v61  ;;  %v5212_v59 = vmax.f32 %v3969_v3, 0.0  ;;  %v5216_v23 = vld [vmem:[#allocation75_spill] sm:$0xff] }
 0x151   :  { %5203 = vst [vmem:[#allocation107_spill] sm:$0xff] %v4230_v29  ;;  %v4250_v27 = vmul.f32 %v5194_v8, %v5210_v56  ;;  %v5214_v18 = vmax.f32 %v3973_v34, 0.0  ;;  %v5217_v63 = vmax.f32 %v5216_v23, 0.0  ;;  %v5219_v1 = vmax.f32 %v3980_v7, 0.0  ;;  %v5220_v56 = vld [vmem:[#allocation110_spill] sm:$0xff] }
 0x152   :  { %5205 = vst [vmem:[#allocation88_spill] sm:$0xff] %v4235_v15  ;;  %5207 = vst [vmem:[#allocation15_spill] sm:$0xff] %v4240_v39  ;;  %v4255_v44 = vmul.f32 %v5194_v8, %v5212_v59  ;;  %v5222_v3 = vmax.f32 %v3986_v55, 0.0  ;;  %v5226_v15 = vld [vmem:[#allocation77_spill] sm:$0xff]  ;;  %v5230_v7 = vld [vmem:[#allocation78_spill] sm:$0xff]  ;;  %v5233_v55 = vmax.f32 %v5182_v14, 0.0 }
 0x153   :  { %5209 = vst [vmem:[#allocation57_spill] sm:$0xff] %v4245_v25  ;;  %5211 = vst [vmem:[#allocation16_spill] sm:$0xff] %v4250_v27  ;;  %v4260_v28 = vmul.f32 %v5194_v8, %v5214_v18  ;;  %v4265_v12 = vmul.f32 %v5194_v8, %v5217_v63  ;;  %v1415_v61 = vmul.f32 %v1387_v20, %v5219_v1  ;;  %v5221_v27 = vmax.f32 %v5220_v56, 0.0  ;;  %v5228_v8 = vld [vmem:[#allocation112_spill] sm:$0xff] }
 0x154   :  { %5213 = vst [vmem:[#allocation89_spill] sm:$0xff] %v4255_v44  ;;  %v1417_v59 = vmul.f32 %v1387_v20, %v5222_v3  ;;  %v5223_v44 = vld [vmem:[#allocation76_spill] sm:$0xff]  ;;  %v5225_v18 = vmax.f32 %v3992_v6, 0.0  ;;  %v5227_v23 = vmax.f32 %v5226_v15, 0.0  ;;  %v5229_v63 = vmax.f32 %v5228_v8, 0.0 }
 0x155   :  { %5215 = vst [vmem:[#allocation17_spill] sm:$0xff] %v4260_v28  ;;  %5218 = vst [vmem:[#allocation58_spill] sm:$0xff] %v4265_v12  ;;  %v1416_v25 = vmul.f32 %v1387_v20, %v5221_v27  ;;  %v5224_v39 = vmax.f32 %v5223_v44, 0.0  ;;  %v5231_v1 = vmax.f32 %v5230_v7, 0.0  ;;  %v5232_v27 = vmax.f32 %v4004_v24, 0.0  ;;  %v5240_v7 = vld [vmem:[#allocation33_spill] sm:$0xff] }
 0x156   :  { %v1419_v28 = vmul.f32 %v1387_v20, %v5225_v18  ;;  %v1420_v29 = vmul.f32 %v1387_v20, %v5227_v23  ;;  %v1421_v12 = vmul.f32 %v1387_v20, %v5229_v63  ;;  %v4289_v44 = vmul.f32 %v1387_v20, %v5233_v55 }
 0x157   :  { %v1418_v34 = vmul.f32 %v1387_v20, %v5224_v39  ;;  %v1422_v19 = vmul.f32 %v1387_v20, %v5231_v1  ;;  %v4285_v56 = vmul.f32 %v1387_v20, %v5232_v27  ;;  %v5234_v6 = vmax.f32 %v5183_v47, 0.0  ;;  %v5244_v27 = vld [vmem:[#allocation61_spill] sm:$0xff] }
 0x158   :  { %v5235_v15 = vmax.f32 %v4013_v32, 0.0  ;;  %v5236_v18 = vmax.f32 %v5184_v48, 0.0  ;;  %v5237_v24 = vmax.f32 %v4019_v58, 0.0  ;;  %v5238_v14 = vmax.f32 %v5185_v54, 0.0 }
 0x159   :  { %v4293_v39 = vmul.f32 %v1387_v20, %v5234_v6  ;;  %v5241_v47 = vmax.f32 %v5240_v7, 0.0  ;;  %v5243_v32 = vmax.f32 %v5186_v22, 0.0  ;;  %v4318_v6 = vpop.permute.xlu1 %1396  ;;  %v5245_v48 = vmax.f32 %v5187_v50, 0.0 }
 0x15a   :  { %v4297_v3 = vmul.f32 %v1387_v20, %v5235_v15  ;;  %v4301_v23 = vmul.f32 %v1387_v20, %v5236_v18  ;;  %v4305_v8 = vmul.f32 %v1387_v20, %v5237_v24  ;;  %v4309_v63 = vmul.f32 %v1387_v20, %v5238_v14  ;;  %v5246_v15 = vld [vmem:[#allocation36_spill] sm:$0xff] }
 0x15b   :  { %v4313_v1 = vmul.f32 %v1387_v20, %v5241_v47  ;;  %v1431_v55 = vmul.f32 %v5244_v27, %v5243_v32  ;;  %v1432_v58 = vmul.f32 %v5244_v27, %v5245_v48  ;;  %v5247_v18 = vmax.f32 %v5246_v15, 0.0 }
 0x15c   :  { %5239 = vst [vmem:[#allocation18_spill] sm:$0xff] %v4309_v63  ;;  %v5248_v24 = vmax.f32 %v4041_v57, 0.0  ;;  %v5249_v20 = vmax.f32 %v4045_v43, 0.0  ;;  %v5250_v7 = vmax.f32 %v4049_v31, 0.0  ;;  %v5251_v50 = vmax.f32 %v4053_v13, 0.0 }
 0x15d   :  { %5242 = vst [vmem:[#allocation90_spill] sm:$0xff] %v4313_v1  ;;  %v1433_v54 = vmul.f32 %v5244_v27, %v5247_v18  ;;  %v5252_v48 = vmax.f32 %v4057_v60, 0.0  ;;  %v5253_v57 = vmax.f32 %v4061_v10, 0.0  ;;  %v5255_v43 = vmax.f32 %v4065_v5, 0.0 }
 0x15e   :  { %v1434_v14 = vmul.f32 %v5244_v27, %v5248_v24  ;;  %v1435_v22 = vmul.f32 %v5244_v27, %v5249_v20  ;;  %v1436_v47 = vmul.f32 %v5244_v27, %v5250_v7  ;;  %v1437_v32 = vmul.f32 %v5244_v27, %v5251_v50 }
 0x15f   :  { %v1438_v15 = vmul.f32 %v5244_v27, %v5252_v48  ;;  %v4344_v18 = vmul.f32 %v5244_v27, %v5253_v57  ;;  %v4349_v24 = vmul.f32 %v5244_v27, %v5255_v43  ;;  %v5257_v31 = vmax.f32 %v5189_v52, 0.0 }
 0x160   :  { %v5259_v20 = vmax.f32 %v4073_v21, 0.0  ;;  %v5261_v10 = vmax.f32 %v4077_v62, 0.0  ;;  %v5263_v5 = vmax.f32 %v5190_v51, 0.0  ;;  %v5265_v52 = vmax.f32 %v4085_v41, 0.0 }
 0x161   :  { %5254 = vst [vmem:[#allocation19_spill] sm:$0xff] %v4344_v18  ;;  %5256 = vst [vmem:[#allocation59_spill] sm:$0xff] %v4349_v24  ;;  %v4354_v13 = vmul.f32 %v5244_v27, %v5257_v31  ;;  %v5267_v21 = vmax.f32 %v4089_v45, 0.0  ;;  %v5269_v62 = vmax.f32 %v4092_v36, 0.0  ;;  %v5270_v31 = vld [vmem:[#allocation39_spill] sm:$0xff]  ;;  %v5275_v45 = vmax.f32 %v4104_v53, 0.0 }
 0x162   :  { %v4359_v60 = vmul.f32 %v5244_v27, %v5259_v20  ;;  %v4364_v7 = vmul.f32 %v5244_v27, %v5261_v10  ;;  %v4369_v50 = vmul.f32 %v5244_v27, %v5263_v5  ;;  %v4374_v48 = vmul.f32 %v5244_v27, %v5265_v52  ;;  %v5273_v5 = vld [vmem:[#allocation40_spill] sm:$0xff] }
 0x163   :  { %5258 = vst [vmem:[#allocation20_spill] sm:$0xff] %v4354_v13  ;;  %v4379_v57 = vmul.f32 %v5244_v27, %v5267_v21  ;;  %v1447_v43 = vmul.f32 %v4318_v6, %v5269_v62  ;;  %v5271_v20 = vmax.f32 %v5270_v31, 0.0  ;;  %v5272_v10 = vmax.f32 %v4098_v49, 0.0  ;;  %v5277_v62 = vld [vmem:[#allocation41_spill] sm:$0xff] }
 0x164   :  { %5260 = vst [vmem:[#allocation91_spill] sm:$0xff] %v4359_v60  ;;  %5262 = vst [vmem:[#allocation21_spill] sm:$0xff] %v4364_v7  ;;  %v5274_v52 = vmax.f32 %v5273_v5, 0.0  ;;  %v1451_v27 = vmul.f32 %v4318_v6, %v5275_v45  ;;  %v5276_v36 = vmax.f32 %v4107_v2, 0.0  ;;  %v5278_v31 = vmax.f32 %v5277_v62, 0.0 }
 0x165   :  { %5264 = vst [vmem:[#allocation60_spill] sm:$0xff] %v4369_v50  ;;  %5266 = vst [vmem:[#allocation22_spill] sm:$0xff] %v4374_v48  ;;  %v1448_v51 = vmul.f32 %v4318_v6, %v5271_v20  ;;  %v1449_v41 = vmul.f32 %v4318_v6, %v5272_v10  ;;  %v5281_v5 = vmax.f32 %v4116_v33, 0.0  ;;  %v5283_v53 = vmax.f32 %v4119_v30, 0.0 }
 0x166   :  { %5268 = vst [vmem:[#allocation93_spill] sm:$0xff] %v4379_v57  ;;  %v1450_v48 = vmul.f32 %v4318_v6, %v5274_v52  ;;  %v1452_v21 = vmul.f32 %v4318_v6, %v5276_v36  ;;  %v1453_v20 = vmul.f32 %v4318_v6, %v5278_v31  ;;  %v5279_v57 = vld [vmem:[#allocation42_spill] sm:$0xff]  ;;  %v1463_v2 = vadd.f32 %v1415_v61, %v1399_v0 }
 0x167   :  { %v5280_v49 = vmax.f32 %v5279_v57, 0.0  ;;  %v4408_v52 = vmul.f32 %v4318_v6, %v5281_v5  ;;  %v4413_v45 = vmul.f32 %v4318_v6, %v5283_v53  ;;  %v1472_v36 = vadd.f32 %v1416_v25, %v1400_v4 }
 0x168   :  { %v1481_v50 = vadd.f32 %v1417_v59, %v1401_v40  ;;  %v1490_v62 = vadd.f32 %v1418_v34, %v1402_v42  ;;  %v1499_v7 = vadd.f32 %v1419_v28, %v1403_v46  ;;  %v1508_v31 = vadd.f32 %v1420_v29, %v1404_v11 }
 0x169   :  { %v1454_v10 = vmul.f32 %v4318_v6, %v5280_v49  ;;  %5282 = vst [vmem:[#allocation23_spill] sm:$0xff] %v4408_v52  ;;  %5284 = vst [vmem:[#allocation62_spill] sm:$0xff] %v4413_v45  ;;  %v1517_v60 = vadd.f32 %v1421_v12, %v1405_v37  ;;  %v1464_v57 = vadd.f32 %v1463_v2, %v1431_v55  ;;  %v5287_v2 = vmax.f32 %v5191_v16, 0.0 }
 0x16a   :  { %v1473_v1 = vadd.f32 %v1472_v36, %v1432_v58  ;;  %v1482_v49 = vadd.f32 %v1481_v50, %v1433_v54  ;;  %v1526_v13 = vadd.f32 %v1422_v19, %v1406_v35  ;;  %v1491_v33 = vadd.f32 %v1490_v62, %v1434_v14 }
 0x16b   :  { %v1500_v24 = vadd.f32 %v1499_v7, %v1435_v22  ;;  %v1509_v5 = vadd.f32 %v1508_v31, %v1436_v47  ;;  %v1518_v52 = vadd.f32 %v1517_v60, %v1437_v32  ;;  %v1465_v18 = vadd.f32 %v1464_v57, %v1447_v43 }
 0x16c   :  { %v1474_v30 = vadd.f32 %v1473_v1, %v1448_v51  ;;  %v1483_v63 = vadd.f32 %v1482_v49, %v1449_v41  ;;  %v1527_v53 = vadd.f32 %v1526_v13, %v1438_v15  ;;  %v1492_v45 = vadd.f32 %v1491_v33, %v1450_v48  ;;  %v5290_v49 = vld [vmem:[#allocation99_spill] sm:$0xff] }
 0x16d   :  { %v1501_v0 = vadd.f32 %v1500_v24, %v1451_v27  ;;  %v1510_v4 = vadd.f32 %v1509_v5, %v1452_v21  ;;  %v1519_v40 = vadd.f32 %v1518_v52, %v1453_v20  ;;  %v1466_v42 = vrot.slane %v1465_v18, 4 }
 0x16e   :  { %v1475_v46 = vrot.slane %v1474_v30, 4  ;;  %v1484_v11 = vrot.slane %v1483_v63, 4  ;;  %v1528_v37 = vadd.f32 %v1527_v53, %v1454_v10  ;;  %v1493_v29 = vrot.slane %v1492_v45, 4 }
 0x16f   :  { %v1502_v25 = vrot.slane %v1501_v0, 4  ;;  %v1511_v28 = vrot.slane %v1510_v4, 4  ;;  %v1520_v19 = vrot.slane %v1519_v40, 4  ;;  %v1467_v35 = vadd.f32 %v1466_v42, %v1465_v18 }
 0x170   :  { %v1476_v12 = vadd.f32 %v1475_v46, %v1474_v30  ;;  %v1485_v61 = vadd.f32 %v1484_v11, %v1483_v63  ;;  %v1529_v59 = vrot.slane %v1528_v37, 4  ;;  %v1494_v34 = vadd.f32 %v1493_v29, %v1492_v45  ;;  %v5294_v11 = vld [vmem:[#allocation15_spill] sm:$0xff]  ;;  %v5295_v29 = vld [vmem:[#allocation57_spill] sm:$0xff] }
 0x171   :  { %v1503_v1 = vadd.f32 %v1502_v25, %v1501_v0  ;;  %v1512_v55 = vadd.f32 %v1511_v28, %v1510_v4  ;;  %v1521_v58 = vadd.f32 %v1520_v19, %v1519_v40  ;;  %v1468_v54 = vrot.slane %v1467_v35, 2  ;;  %v5292_v40 = vld [vmem:[#allocation107_spill] sm:$0xff]  ;;  %v5296_v28 = vld [vmem:[#allocation16_spill] sm:$0xff] }
 0x172   :  { %v1477_v14 = vrot.slane %v1476_v12, 2  ;;  %v1486_v22 = vrot.slane %v1485_v61, 2  ;;  %v1530_v47 = vadd.f32 %v1529_v59, %v1528_v37  ;;  %v1495_v32 = vrot.slane %v1494_v34, 2  ;;  %v5299_v59 = vld [vmem:[#allocation18_spill] sm:$0xff] }
 0x173   :  { %v1504_v15 = vrot.slane %v1503_v1, 2  ;;  %v1513_v24 = vrot.slane %v1512_v55, 2  ;;  %v1522_v13 = vrot.slane %v1521_v58, 2  ;;  %v1469_v60 = vadd.f32 %v1468_v54, %v1467_v35  ;;  %v5297_v35 = vld [vmem:[#allocation89_spill] sm:$0xff] }
 0x174   :  { %v1478_v7 = vadd.f32 %v1477_v14, %v1476_v12  ;;  %v4415_v50 = vadd.f32 %v1486_v22, %v1485_v61  ;;  %v1531_v18 = vrot.slane %v1530_v47, 2  ;;  %v4417_v48 = vadd.f32 %v1495_v32, %v1494_v34  ;;  %v5298_v61 = vld [vmem:[#allocation17_spill] sm:$0xff]  ;;  %v5303_v14 = vld [vmem:[#allocation58_spill] sm:$0xff] }
 0x175   :  { %v4419_v63 = vadd.f32 %v1504_v15, %v1503_v1  ;;  %v4421_v43 = vadd.f32 %v1513_v24, %v1512_v55  ;;  %v4423_v51 = vadd.f32 %v1522_v13, %v1521_v58  ;;  %v5285_v41 = vmax.f32 %v4122_v9, 0.0  ;;  %v5300_v1 = vld [vmem:[#allocation19_spill] sm:$0xff]  ;;  %v5306_v32 = vld [vmem:[#allocation21_spill] sm:$0xff]  ;;  %v5308_v13 = vld [vmem:[#allocation22_spill] sm:$0xff] }
 0x176   :  { %v1470_v21 = vrot.slane %v1469_v60, 1  ;;  %v1479_v20 = vrot.slane %v1478_v7, 1  ;;  %v4428_v10 = vadd.f32 %v1531_v18, %v1530_v47  ;;  %v5286_v52 = vmax.f32 %v4125_v38, 0.0  ;;  %v5301_v55 = vld [vmem:[#allocation59_spill] sm:$0xff]  ;;  %v5310_v18 = vld [vmem:[#allocation62_spill] sm:$0xff] }
 0x177   :  { %v1457_v27 = vmul.f32 %v4318_v6, %v5285_v41  ;;  %v1459_v36 = vmul.f32 %v4318_v6, %v5287_v2  ;;  %v5288_v62 = vmax.f32 %v4131_v17, 0.0  ;;  %v5289_v9 = vmax.f32 %v5192_v26, 0.0  ;;  %v5305_v47 = vld [vmem:[#allocation91_spill] sm:$0xff] }
 0x178   :  { %v1458_v45 = vmul.f32 %v4318_v6, %v5286_v52  ;;  %v5291_v33 = vmax.f32 %v5290_v49, 0.0  ;;  %v1488_v38 = vrot.slane %v4415_v50, 1  ;;  %v1497_v30 = vrot.slane %v4417_v48, 1 }
 0x179   :  { %v1460_v31 = vmul.f32 %v4318_v6, %v5288_v62  ;;  %v1461_v57 = vmul.f32 %v4318_v6, %v5289_v9  ;;  %v1506_v16 = vrot.slane %v4419_v63, 1  ;;  %v4448_v53 = vadd.f32 %v1470_v21, %v1469_v60  ;;  %v5309_v60 = vld [vmem:[#allocation23_spill] sm:$0xff] }
 0x17a   :  { %v1462_v5 = vmul.f32 %v4318_v6, %v5291_v33  ;;  %v4450_v0 = vadd.f32 %v1479_v20, %v1478_v7  ;;  %v1515_v17 = vrot.slane %v4421_v43, 1  ;;  %v1524_v26 = vrot.slane %v4423_v51, 1  ;;  %v5293_v6 = vld [vmem:[#allocation88_spill] sm:$0xff]  ;;  %v5311_v20 = vld [vmem:[#allocation93_spill] sm:$0xff] }
 0x17b   :  { %v1533_v4 = vrot.slane %v4428_v10, 1  ;;  %v1535_v42 = vadd.f32 %v4285_v56, %v5292_v40  ;;  %v1544_v46 = vadd.f32 %v4289_v44, %v5293_v6  ;;  %v1553_v37 = vadd.f32 %v4293_v39, %v5294_v11  ;;  %v5302_v44 = vld [vmem:[#allocation20_spill] sm:$0xff]  ;;  %v5304_v39 = vld [vmem:[#allocation90_spill] sm:$0xff] }
 0x17c   :  { %v1562_v25 = vadd.f32 %v4297_v3, %v5295_v29  ;;  %v1571_v19 = vadd.f32 %v4301_v23, %v5296_v28  ;;  %v1580_v12 = vadd.f32 %v4305_v8, %v5297_v35  ;;  %v1589_v34 = vadd.f32 %v5299_v59, %v5298_v61  ;;  %v5307_v23 = vld [vmem:[#allocation60_spill] sm:$0xff] }
 0x17d   :  { %v1536_v56 = vadd.f32 %v1535_v42, %v5300_v1  ;;  %v1545_v58 = vadd.f32 %v1544_v46, %v5301_v55  ;;  %v1554_v54 = vadd.f32 %v1553_v37, %v5302_v44  ;;  %v1598_v22 = vadd.f32 %v5304_v39, %v5303_v14 }
 0x17e   :  { %v1563_v3 = vadd.f32 %v1562_v25, %v5305_v47  ;;  %v1572_v15 = vadd.f32 %v1571_v19, %v5306_v32  ;;  %v1581_v24 = vadd.f32 %v1580_v12, %v5307_v23  ;;  %v1590_v8 = vadd.f32 %v1589_v34, %v5308_v13 }
 0x17f   :  { %v1537_v7 = vadd.f32 %v1536_v56, %v5309_v60  ;;  %v1546_v41 = vadd.f32 %v1545_v58, %v5310_v18  ;;  %v1555_v21 = vadd.f32 %v1554_v54, %v1457_v27  ;;  %v1599_v52 = vadd.f32 %v1598_v22, %v5311_v20 }
 0x180   :  { %v1564_v2 = vadd.f32 %v1563_v3, %v1458_v45  ;;  %v1573_v62 = vadd.f32 %v1572_v15, %v1459_v36  ;;  %v1582_v9 = vadd.f32 %v1581_v24, %v1460_v31  ;;  %v1591_v49 = vadd.f32 %v1590_v8, %v1461_v57 }
 0x181   :  { %v1538_v33 = vrot.slane %v1537_v7, 4  ;;  %v1547_v40 = vrot.slane %v1546_v41, 4  ;;  %v1556_v42 = vrot.slane %v1555_v21, 4  ;;  %v1600_v6 = vadd.f32 %v1599_v52, %v1462_v5 }
 0x182   :  { %v1565_v46 = vrot.slane %v1564_v2, 4  ;;  %v1574_v11 = vrot.slane %v1573_v62, 4  ;;  %v1583_v37 = vrot.slane %v1582_v9, 4  ;;  %v1592_v29 = vrot.slane %v1591_v49, 4 }
 0x183   :  { %v1539_v25 = vadd.f32 %v1538_v33, %v1537_v7  ;;  %v1548_v28 = vadd.f32 %v1547_v40, %v1546_v41  ;;  %v1557_v19 = vadd.f32 %v1556_v42, %v1555_v21  ;;  %v1601_v35 = vrot.slane %v1600_v6, 4 }
 0x184   :  { %v1566_v12 = vadd.f32 %v1565_v46, %v1564_v2  ;;  %v1575_v27 = vadd.f32 %v1574_v11, %v1573_v62  ;;  %v1584_v61 = vadd.f32 %v1583_v37, %v1582_v9  ;;  %v1593_v59 = vadd.f32 %v1592_v29, %v1591_v49  ;;  %v5312_v49 = vld [vmem:[#allocation111_spill] sm:$0xff] }
 0x185   :  { %v1540_v45 = vrot.slane %v1539_v25, 2  ;;  %v1549_v36 = vrot.slane %v1548_v28, 2  ;;  %v1558_v31 = vrot.slane %v1557_v19, 2  ;;  %v1602_v57 = vadd.f32 %v1601_v35, %v1600_v6 }
 0x186   :  { %v1567_v34 = vrot.slane %v1566_v12, 2  ;;  %v1576_v1 = vrot.slane %v1575_v27, 2  ;;  %v1585_v56 = vrot.slane %v1584_v61, 2  ;;  %v1594_v5 = vrot.slane %v1593_v59, 2 }
 0x187   :  { %v1541_v55 = vadd.f32 %v1540_v45, %v1539_v25  ;;  %v1550_v58 = vadd.f32 %v1549_v36, %v1548_v28  ;;  %v1559_v44 = vadd.f32 %v1558_v31, %v1557_v19  ;;  %v1603_v54 = vrot.slane %v1602_v57, 2 }
 0x188   :  { %v1568_v14 = vadd.f32 %v1567_v34, %v1566_v12  ;;  %v1577_v39 = vadd.f32 %v1576_v1, %v1575_v27  ;;  %v1586_v22 = vadd.f32 %v1585_v56, %v1584_v61  ;;  %v1595_v47 = vadd.f32 %v1594_v5, %v1593_v59 }
 0x189   :  { %v1542_v3 = vrot.slane %v1541_v55, 1  ;;  %v1551_v32 = vrot.slane %v1550_v58, 1  ;;  %v1560_v15 = vrot.slane %v1559_v44, 1  ;;  %v1604_v23 = vadd.f32 %v1603_v54, %v1602_v57  ;;  %v5313_v57 = vld [vmem:[#allocation6_spill] sm:$0xff] }
 0x18a   :  { %v1569_v24 = vrot.slane %v1568_v14, 1  ;;  %v1578_v13 = vrot.slane %v1577_v39, 1  ;;  %v1587_v8 = vrot.slane %v1586_v22, 1  ;;  %v1596_v60 = vrot.slane %v1595_v47, 1 }
 0x18b   :  { %v1489_v7 = vadd.f32 %v1488_v38, %v4415_v50  ;;  %v1498_v18 = vadd.f32 %v1497_v30, %v4417_v48  ;;  %v1507_v41 = vadd.f32 %v1506_v16, %v4419_v63  ;;  %v1605_v21 = vrot.slane %v1604_v23, 1 }
 0x18c   :  { %v1516_v20 = vadd.f32 %v1515_v17, %v4421_v43  ;;  %v1525_v52 = vadd.f32 %v1524_v26, %v4423_v51  ;;  %v1534_v50 = vadd.f32 %v1533_v4, %v4428_v10  ;;  %v1543_v38 = vadd.f32 %v1542_v3, %v1541_v55 }
 0x18d   :  { %v1552_v2 = vadd.f32 %v1551_v32, %v1550_v58  ;;  %v1561_v48 = vadd.f32 %v1560_v15, %v1559_v44  ;;  %v1570_v30 = vadd.f32 %v1569_v24, %v1568_v14  ;;  %v1579_v62 = vadd.f32 %v1578_v13, %v1577_v39 }
 0x18e   :  { %v1588_v9 = vadd.f32 %v1587_v8, %v1586_v22  ;;  %v1597_v63 = vadd.f32 %v1596_v60, %v1595_v47  ;;  %v1606_v16 = vadd.f32 %v1605_v21, %v1604_v23  ;;  %v1617_v33 = vadd.f32 %v5312_v49, %v4448_v53 }
 0x18f   :  { %v1618_v43 = vadd.f32 %v5312_v49, %v4450_v0  ;;  %v1619_v51 = vadd.f32 %v5312_v49, %v1489_v7  ;;  %v1620_v17 = vadd.f32 %v5312_v49, %v1498_v18  ;;  %v1621_v10 = vadd.f32 %v5312_v49, %v1507_v41 }
 0x190   :  { %v1622_v26 = vadd.f32 %v5312_v49, %v1516_v20  ;;  %v1623_v4 = vadd.f32 %v5312_v49, %v1525_v52  ;;  %v1624_v40 = vadd.f32 %v5312_v49, %v1534_v50  ;;  %v1625_v42 = vadd.f32 %v5312_v49, %v1543_v38 }
 0x191   :  { %v1626_v6 = vadd.f32 %v5312_v49, %v1552_v2  ;;  %v1627_v53 = vadd.f32 %v5312_v49, %v1561_v48  ;;  %v1628_v0 = vadd.f32 %v5312_v49, %v1570_v30  ;;  %v1629_v46 = vadd.f32 %v5312_v49, %v1579_v62 }
 0x192   :  { %v1630_v11 = vadd.f32 %v5312_v49, %v1588_v9  ;;  %v1631_v37 = vadd.f32 %v5312_v49, %v1597_v63  ;;  %v1632_v29 = vadd.f32 %v5312_v49, %v1606_v16  ;;  %v1795_v25 = vmov 1966171168  }
 0x193   :  { %v1654_v28 = vunpack.c.l.s4 %v1795_v25  ;;  %v1649_v19 = vcombine.low %v1617_v33, %v1618_v43  ;;  %v1650_v35 = vcombine.low %v1619_v51, %v1620_v17  ;;  %v1651_v12 = vcombine.low %v1621_v10, %v1622_v26 }
 0x194   :  { %v1652_v27 = vcombine.low %v1623_v4, %v1624_v40  ;;  %v1698_v59 = vcombine.low %v1625_v42, %v1626_v6  ;;  %v1699_v45 = vcombine.low %v1627_v53, %v1628_v0  ;;  %v1700_v36 = vcombine.low %v1629_v46, %v1630_v11 }
 0x195   :  { %v1655_v61 = vunpack.c.0.s8 %v1654_v28  ;;  %v1701_v31 = vcombine.low %v1631_v37, %v1632_v29 }
 0x197   :  { %v1658_v34 = vsub.s32 %v1655_v61, %v5313_v57 }
 0x199   :  { %v1659_v1 = vrot.slane %v1649_v19, %v1658_v34  ;;  %v1666_v56 = vrot.slane %v1650_v35, %v1658_v34  ;;  %v1673_v5 = vrot.slane %v1651_v12, %v1658_v34  ;;  %v1680_v55 = vrot.slane %v1652_v27, %v1658_v34 }
 0x19a   :  { %v1708_v58 = vrot.slane %v1698_v59, %v1658_v34  ;;  %v1715_v44 = vrot.slane %v1699_v45, %v1658_v34  ;;  %v1722_v54 = vrot.slane %v1700_v36, %v1658_v34  ;;  %v1729_v14 = vrot.slane %v1701_v31, %v1658_v34 }
 0x19b   :  { %v1681_v39 = vcombine.low %v1659_v1, %v1666_v56  ;;  %v1682_v22 = vcombine.low %v1673_v5, %v1680_v55 }
 0x19c   :  { %v1730_v47 = vcombine.low %v1708_v58, %v1715_v44  ;;  %v1731_v3 = vcombine.low %v1722_v54, %v1729_v14 }
 0x19d   :  { %v1689_v32 = vrot.slane %v1681_v39, %v1658_v34  ;;  %v1696_v15 = vrot.slane %v1682_v22, %v1658_v34 }
 0x19e   :  { %v1738_v23 = vrot.slane %v1730_v47, %v1658_v34  ;;  %v1745_v24 = vrot.slane %v1731_v3, %v1658_v34 }
 0x19f   :  { %v1697_v13 = vcombine.low %v1689_v32, %v1696_v15 }
 0x1a0   :  { %v1746_v8 = vcombine.low %v1738_v23, %v1745_v24 }
 0x1a1   :  { %1749 = vst [vmem:[#allocation3] sm:$0xff] %v1697_v13 }
 0x1a2   :  { %1750 = vst [vmem:[#allocation3 + $0x8] sm:$0xff] %v1746_v8 }
 0x1a3   :  { %1781 = shalt.err (!%p1778_p4)
}
 0x1a4   :  { %s1782_s7 = scalar_lea.hbm %s4535_s5, 256 }
 0x1a5   :  { %p1783_p5 = scmp.ne.s32.totalorder %s4535_s5, %s1782_s7  ;;  %p1786_p6 = scmp.lt.u32.totalorder %s1782_s7, %s4535_s5 }
 0x1a7   :  { %p1788_p7 = pnand %p1786_p6, %p1783_p5 }
 0x1a9   :  { %1791 = shalt.err (!%p1788_p7)
}
 0x1aa   :  { %1760 = dma.vmem_to_hbm [thread:$0]  %s1758_s28, 256, %s4535_s5, [#allocation4]  }
 0x1ab   :  { %1792 = dma.done.wait [#allocation4], 256  }
 0x1ac   :  { %1793 = vsyncadd [#allocation4], 4294967040 }
 0x1ad   :  { %1764 = vsyncpa [#allocation4], 1 }

</bundles_post_ra>
